<compile_context>
chip_gen: v7x
topology: tpu7x:2x2x1
jax: 0.10.0
libtpu: 0.0.40
codegen_flags: <defaults>
</compile_context>

<pallas_src>
import functools
import math

import jax
import jax.numpy as jnp
from jax.experimental import pallas as pl
from jax.experimental.pallas import tpu as pltpu

DT = jnp.bfloat16  # storage / MXU operand dtype (accumulation is always f32)


# --------------------------------------------------------------------------
# Small helpers
# --------------------------------------------------------------------------
def _spatial_tile(hw):
    for t in (2048, 1024, 512, 256, 128):
        if hw % t == 0:
            return t
    return hw  # fallback: whole (non-128-aligned) spatial extent in one block


def _compiler_params():
    return pltpu.CompilerParams(dimension_semantics=("parallel", "parallel"))


def im2col3x3(x, H, W):
    """(N, C, H*W) -> (N, 9*C, H*W), 'same' zero padding, tap-major order."""
    N, C, _ = x.shape
    xi = x.reshape(N, C, H, W)
    xp = jnp.pad(xi, ((0, 0), (0, 0), (1, 1), (1, 1)))
    cols = jnp.concatenate(
        [xp[:, :, i:i + H, j:j + W] for i in range(3) for j in range(3)],
        axis=1)
    return cols.reshape(N, 9 * C, H * W)


def pixel_shuffle(x, r):
    """PyTorch PixelShuffle semantics on NCHW."""
    N, Crr, H, W = x.shape
    C = Crr // (r * r)
    x = x.reshape(N, C, r, r, H, W)
    x = jnp.transpose(x, (0, 1, 4, 2, 5, 3))
    return x.reshape(N, C, H * r, W * r)


# --------------------------------------------------------------------------
# Pallas kernels (all operate on (C, T) tiles; T = spatial tile, lane axis)
# --------------------------------------------------------------------------
def _conv_kernel(x_ref, w_ref, b_ref, o_ref, *, act):
    acc = jnp.dot(w_ref[...], x_ref[0], preferred_element_type=jnp.float32)
    acc = acc + b_ref[...]
    if act == "relu":
        acc = jnp.maximum(acc, 0.0)
    o_ref[0] = acc.astype(o_ref.dtype)


def _conv_res_kernel(x_ref, w_ref, b_ref, r_ref, o_ref, *, act):
    acc = jnp.dot(w_ref[...], x_ref[0], preferred_element_type=jnp.float32)
    acc = acc + b_ref[...]
    if act == "relu":
        acc = jnp.maximum(acc, 0.0)
    acc = acc + r_ref[0].astype(jnp.float32)
    o_ref[0] = acc.astype(o_ref.dtype)


def _head1_kernel(x_ref, wa_ref, ba_ref, w0_ref, b0_ref,
                  sres_ref, sden_ref, h_ref, *, rc):
    # BasicBlock('head') stage 1: allocation 1x1 conv + dpb0 1x1 conv + ReLU.
    x = x_ref[0]
    s = jnp.dot(wa_ref[...], x, preferred_element_type=jnp.float32) + ba_ref[...]
    sres_ref[0] = s[:rc].astype(sres_ref.dtype)
    sden_ref[0] = s[rc:].astype(sden_ref.dtype)
    h = jnp.dot(w0_ref[...], x, preferred_element_type=jnp.float32) + b0_ref[...]
    h_ref[0] = jnp.maximum(h, 0.0).astype(h_ref.dtype)


def _body1_kernel(xr_ref, xd_ref, wr_ref, wd_ref, b_ref, h_ref):
    # BasicBlock('body') stage 1: dpb0 1x1 conv on cat([x_res, x_dense]) + ReLU
    # (weights are split so the channel concat never materializes).
    acc = jnp.dot(wr_ref[...], xr_ref[0], preferred_element_type=jnp.float32)
    acc = acc + jnp.dot(wd_ref[...], xd_ref[0], preferred_element_type=jnp.float32)
    acc = acc + b_ref[...]
    h_ref[0] = jnp.maximum(acc, 0.0).astype(h_ref.dtype)


def _stage2_kernel(hc_ref, w_ref, b_ref, xr_ref, xrout_ref, dout_ref, *, rc):
    # dpb1 3x3 conv (taps folded into K) + residual add + res/dense split.
    y = jnp.dot(w_ref[...], hc_ref[0], preferred_element_type=jnp.float32)
    y = y + b_ref[...]
    xrout_ref[0] = (y[:rc] + xr_ref[0].astype(jnp.float32)).astype(xrout_ref.dtype)
    dout_ref[0] = y[rc:].astype(dout_ref.dtype)


def _paf_kernel(belta_ref, xr_ref, xd_ref, yr_ref, yd_ref,
                wr_ref, wd_ref, b_ref, xin_ref, f0_ref, o_ref):
    # PAF: channelwise SE scale, pathfusion 1x1 conv, + x + belta*F_0 epilogue.
    xr = (xr_ref[0].astype(jnp.float32) * yr_ref[0]).astype(wr_ref.dtype)
    xd = (xd_ref[0].astype(jnp.float32) * yd_ref[0]).astype(wd_ref.dtype)
    acc = jnp.dot(wr_ref[...], xr, preferred_element_type=jnp.float32)
    acc = acc + jnp.dot(wd_ref[...], xd, preferred_element_type=jnp.float32)
    acc = acc + b_ref[...]
    acc = acc + xin_ref[0].astype(jnp.float32)
    acc = acc + belta_ref[...] * f0_ref[0].astype(jnp.float32)
    o_ref[0] = acc.astype(o_ref.dtype)


# --------------------------------------------------------------------------
# pallas_call wrappers
# --------------------------------------------------------------------------
def conv_folded(x, w2, b2, act=None, residual=None):
    """out = act(W @ X + b) [+ residual];  x: (N, K, HW), w2: (Cout, K)."""
    N, K, HW = x.shape
    Cout = w2.shape[0]
    T = _spatial_tile(HW)
    act_spec = lambda c: pl.BlockSpec((1, c, T), lambda n, t: (n, 0, t))
    in_specs = [act_spec(K),
                pl.BlockSpec((Cout, K), lambda n, t: (0, 0)),
                pl.BlockSpec((Cout, 1), lambda n, t: (0, 0))]
    inputs = [x, w2, b2]
    if residual is None:
        kern = functools.partial(_conv_kernel, act=act)
    else:
        in_specs.append(act_spec(Cout))
        inputs.append(residual)
        kern = functools.partial(_conv_res_kernel, act=act)
    return pl.pallas_call(
        kern,
        out_shape=jax.ShapeDtypeStruct((N, Cout, HW), DT),
        grid_spec=pltpu.PrefetchScalarGridSpec(
            num_scalar_prefetch=0,
            grid=(N, HW // T),
            in_specs=in_specs,
            out_specs=act_spec(Cout)),
        compiler_params=_compiler_params(),
    )(*inputs)


def head_stage1(x, hp, rc):
    N, Cin, HW = x.shape
    wa, ba = hp["allocation"]["w2"], hp["allocation"]["b2"]
    w0, b0 = hp["dpb0"]["w2"], hp["dpb0"]["b2"]
    ca, df = wa.shape[0], w0.shape[0]
    T = _spatial_tile(HW)
    act_spec = lambda c: pl.BlockSpec((1, c, T), lambda n, t: (n, 0, t))
    return pl.pallas_call(
        functools.partial(_head1_kernel, rc=rc),
        out_shape=(jax.ShapeDtypeStruct((N, rc, HW), DT),
                   jax.ShapeDtypeStruct((N, ca - rc, HW), DT),
                   jax.ShapeDtypeStruct((N, df, HW), DT)),
        grid_spec=pltpu.PrefetchScalarGridSpec(
            num_scalar_prefetch=0,
            grid=(N, HW // T),
            in_specs=[act_spec(Cin),
                      pl.BlockSpec((ca, Cin), lambda n, t: (0, 0)),
                      pl.BlockSpec((ca, 1), lambda n, t: (0, 0)),
                      pl.BlockSpec((df, Cin), lambda n, t: (0, 0)),
                      pl.BlockSpec((df, 1), lambda n, t: (0, 0))],
            out_specs=[act_spec(rc), act_spec(ca - rc), act_spec(df)]),
        compiler_params=_compiler_params(),
    )(x, wa, ba, w0, b0)


def body_stage1(x_res, x_dense, p0, rc):
    N, _, HW = x_res.shape
    dd = x_dense.shape[1]
    w2, b2 = p0["w2"], p0["b2"]
    wr, wd = w2[:, :rc], w2[:, rc:]
    df = w2.shape[0]
    T = _spatial_tile(HW)
    act_spec = lambda c: pl.BlockSpec((1, c, T), lambda n, t: (n, 0, t))
    return pl.pallas_call(
        _body1_kernel,
        out_shape=jax.ShapeDtypeStruct((N, df, HW), DT),
        grid_spec=pltpu.PrefetchScalarGridSpec(
            num_scalar_prefetch=0,
            grid=(N, HW // T),
            in_specs=[act_spec(rc), act_spec(dd),
                      pl.BlockSpec((df, rc), lambda n, t: (0, 0)),
                      pl.BlockSpec((df, dd), lambda n, t: (0, 0)),
                      pl.BlockSpec((df, 1), lambda n, t: (0, 0))],
            out_specs=act_spec(df)),
        compiler_params=_compiler_params(),
    )(x_res, x_dense, wr, wd, b2)


def stage2(hcols, x_res, p1, rc):
    N, K, HW = hcols.shape
    w2, b2 = p1["w2"], p1["b2"]
    co = w2.shape[0]
    dc = co - rc
    T = _spatial_tile(HW)
    act_spec = lambda c: pl.BlockSpec((1, c, T), lambda n, t: (n, 0, t))
    return pl.pallas_call(
        functools.partial(_stage2_kernel, rc=rc),
        out_shape=(jax.ShapeDtypeStruct((N, rc, HW), DT),
                   jax.ShapeDtypeStruct((N, dc, HW), DT)),
        grid_spec=pltpu.PrefetchScalarGridSpec(
            num_scalar_prefetch=0,
            grid=(N, HW // T),
            in_specs=[act_spec(K),
                      pl.BlockSpec((co, K), lambda n, t: (0, 0)),
                      pl.BlockSpec((co, 1), lambda n, t: (0, 0)),
                      act_spec(rc)],
            out_specs=[act_spec(rc), act_spec(dc)]),
        compiler_params=_compiler_params(),
    )(hcols, w2, b2, x_res)


def paf_fused(tp, belta, x_res, x_dense, yr, yd, x_in, F0, rc):
    N, _, HW = x_res.shape
    dd = x_dense.shape[1]
    wpf, bpf = tp["pathfusion"]["w2"], tp["pathfusion"]["b2"]
    wr, wd = wpf[:, :rc], wpf[:, rc:]
    nf = wpf.shape[0]
    T = _spatial_tile(HW)
    act_spec = lambda c: pl.BlockSpec((1, c, T), lambda n, t: (n, 0, t))
    vec_spec = lambda c: pl.BlockSpec((1, c, 1), lambda n, t: (n, 0, 0))
    belta2 = belta.reshape(1, 1).astype(jnp.float32)
    return pl.pallas_call(
        _paf_kernel,
        out_shape=jax.ShapeDtypeStruct((N, nf, HW), DT),
        grid_spec=pltpu.PrefetchScalarGridSpec(
            num_scalar_prefetch=0,
            grid=(N, HW // T),
            in_specs=[pl.BlockSpec((1, 1), lambda n, t: (0, 0)),
                      act_spec(rc), act_spec(dd),
                      vec_spec(rc), vec_spec(dd),
                      pl.BlockSpec((nf, rc), lambda n, t: (0, 0)),
                      pl.BlockSpec((nf, dd), lambda n, t: (0, 0)),
                      pl.BlockSpec((nf, 1), lambda n, t: (0, 0)),
                      act_spec(nf), act_spec(nf)],
            out_specs=act_spec(nf)),
        compiler_params=_compiler_params(),
    )(belta2, x_res, x_dense, yr, yd, wr, wd, bpf, x_in, F0)


# --------------------------------------------------------------------------
# SE branch (GAP + conv_du) in plain JAX — pure launch overhead as a kernel.
# --------------------------------------------------------------------------
def se_branch(tp, x_res, x_dense, rc):
    gr = jnp.mean(x_res.astype(jnp.float32), axis=-1, keepdims=True)
    gd = jnp.mean(x_dense.astype(jnp.float32), axis=-1, keepdims=True)
    g = jnp.concatenate([gr, gd], axis=1)                     # (N, C, 1)
    z = jnp.einsum("oc,nci->noi", tp["du0"]["w2"], g) + tp["du0"]["b2"]
    z = jnp.maximum(z, 0.0)
    y = jnp.einsum("oc,nci->noi", tp["du1"]["w2"], z) + tp["du1"]["b2"]
    y = jax.nn.sigmoid(y)
    return y[:, :rc], y[:, rc:]


# --------------------------------------------------------------------------
# Parameter initialization (deterministic, synthetic)
# --------------------------------------------------------------------------
class KeyGen:
    def __init__(self, seed):
        self.key = jax.random.PRNGKey(seed)

    def __call__(self):
        self.key, k = jax.random.split(self.key)
        return k


def init_conv(kg, cin, cout, k, dtype=DT):
    fan_in = cin * k * k
    bound = 1.0 / math.sqrt(fan_in)
    w = jax.random.uniform(kg(), (k, k, cin, cout), jnp.float32, -bound, bound)
    b = jax.random.uniform(kg(), (cout,), jnp.float32, -bound, bound)
    # fold taps into the contraction dim, tap-major / channel-minor
    w2 = jnp.transpose(w, (3, 0, 1, 2)).reshape(cout, k * k * cin).astype(dtype)
    return {"w2": w2, "b2": b.reshape(cout, 1)}


def init_params(cfg, seed=0):
    kg = KeyGen(seed)
    nf, nc = cfg["n_feats"], cfg["n_colors"]
    rc, dc, df = cfg["res_chs"], cfg["des_chs"], cfg["dpag_feats"]
    nb, ng, red = cfg["n_dpblocks"], cfg["n_dpagroups"], cfg["reduction"]

    p = {}
    rgb_mean = jnp.array([0.4488, 0.4371, 0.4040], jnp.float32)
    p["sub_bias"] = (-cfg["rgb_range"] * rgb_mean).reshape(1, nc, 1, 1)

    p["SF"] = init_conv(kg, nc, nf, 3)

    groups = []
    for _ in range(ng):
        gp = {"belta": jnp.zeros((1,), jnp.float32)}
        gp["head"] = {
            "allocation": init_conv(kg, nf, rc + dc, 1),
            "dpb0": init_conv(kg, nf, df, 1),
            "dpb1": init_conv(kg, df, rc + dc, 3),
        }
        in_chs = rc + 2 * dc
        body = []
        for _ in range(nb):
            body.append({"dpb0": init_conv(kg, in_chs, df, 1),
                         "dpb1": init_conv(kg, df, rc + dc, 3)})
            in_chs += dc
        gp["body"] = body
        cr = max(in_chs // red, 1)
        gp["tail"] = {
            "du0": init_conv(kg, in_chs, cr, 1, dtype=jnp.float32),
            "du1": init_conv(kg, cr, in_chs, 1, dtype=jnp.float32),
            "pathfusion": init_conv(kg, in_chs, nf, 1),
        }
        groups.append(gp)
    p["SDPG"] = groups

    p["SDPG_conv"] = init_conv(kg, nf, nf, 3)
    p["up0"] = init_conv(kg, nf, (cfg["scale"] ** 2) * nf, 3)
    up1 = init_conv(kg, nf, nc, 3)
    # fold add_mean (1x1 identity conv + bias) into the last conv's bias
    up1["b2"] = up1["b2"] + (cfg["rgb_range"] * rgb_mean).reshape(nc, 1)
    p["up1"] = up1
    return p


# --------------------------------------------------------------------------
# Forward pass
# --------------------------------------------------------------------------
def dpag_forward(gp, x, F0, H, W, rc):
    # head BasicBlock
    s_res, s_dense, h = head_stage1(x, gp["head"], rc)
    hcols = im2col3x3(h, H, W)
    x_res, dpiece = stage2(hcols, s_res, gp["head"]["dpb1"], rc)
    x_dense = jnp.concatenate([s_dense, dpiece], axis=1)
    # body BasicBlocks
    for bp in gp["body"]:
        h = body_stage1(x_res, x_dense, bp["dpb0"], rc)
        hcols = im2col3x3(h, H, W)
        x_res, dpiece = stage2(hcols, x_res, bp["dpb1"], rc)
        # TODO(synk): write dpiece into a preallocated wide dense buffer via
        # input_output_aliases instead of concatenating each block.
        x_dense = jnp.concatenate([x_dense, dpiece], axis=1)
    # tail (PAF) + group residuals, fused
    yr, yd = se_branch(gp["tail"], x_res, x_dense, rc)
    return paf_fused(gp["tail"], gp["belta"], x_res, x_dense, yr, yd, x, F0, rc)


def model_forward(params, x_nchw, cfg):
    N, C, H, W = x_nchw.shape
    nf, nc, sc, rc = cfg["n_feats"], cfg["n_colors"], cfg["scale"], cfg["res_chs"]
    HW = H * W

    x = x_nchw.astype(jnp.float32) + params["sub_bias"]     # sub_mean (1x1 id)
    x = x.reshape(N, C, HW).astype(DT)

    x = conv_folded(im2col3x3(x, H, W), params["SF"]["w2"], params["SF"]["b2"])
    F0 = x
    for gp in params["SDPG"]:
        x = dpag_forward(gp, x, F0, H, W, rc)
    x = conv_folded(im2col3x3(x, H, W), params["SDPG_conv"]["w2"],
                    params["SDPG_conv"]["b2"], residual=F0)  # x + F_0 fused

    # Upsampler (scale=2): conv(nf, 4nf, 3) -> PixelShuffle(2) -> conv(nf, nc, 3)
    x = conv_folded(im2col3x3(x, H, W), params["up0"]["w2"], params["up0"]["b2"])
    x = pixel_shuffle(x.reshape(N, sc * sc * nf, H, W), sc)
    H2, W2 = H * sc, W * sc
    x = x.reshape(N, nf, H2 * W2)
    x = conv_folded(im2col3x3(x, H2, W2), params["up1"]["w2"],
                    params["up1"]["b2"])                     # add_mean folded in
    return x.reshape(N, nc, H2, W2).astype(jnp.float32)


# --------------------------------------------------------------------------
if __name__ == "__main__":
    cfg = dict(n_colors=3, n_feats=16, scale=2, rgb_range=255.0,
               n_dpagroups=2, res_chs=8, des_chs=4, dpag_feats=8,
               n_dpblocks=2, reduction=16)

    params = init_params(cfg, seed=0)

    key = jax.random.PRNGKey(0)
    x = jax.random.uniform(key, (2, cfg["n_colors"], 16, 16), jnp.float32,
                           0.0, cfg["rgb_range"])

    fwd = jax.jit(functools.partial(model_forward, cfg=cfg))
    out = fwd(params, x)
    jax.block_until_ready(out)

    expected = (2, cfg["n_colors"], 16 * cfg["scale"], 16 * cfg["scale"])
    assert out.shape == expected, (out.shape, expected)
    assert bool(jnp.all(jnp.isfinite(out)))
    print("KERNEL_OK")
</pallas_src>

<mosaic_0001>
module attributes {stable_mosaic.version = 11 : i64} {
  func.func @_conv_kernel(%arg0: i32, %arg1: i32, %arg2: memref<1x27x256xbf16, #tpu.memory_space<vmem>>, %arg3: memref<16x27xbf16, #tpu.memory_space<vmem>>, %arg4: memref<16x1xf32, #tpu.memory_space<vmem>>, %arg5: memref<1x16x256xbf16, #tpu.memory_space<vmem>>) attributes {dimension_semantics = [#tpu.dimension_semantics<parallel>, #tpu.dimension_semantics<parallel>], iteration_bounds = array<i64: 2, 1>, scalar_prefetch = 0 : i64, scratch_operands = 0 : i64, tpu.core_type = #tpu.core_type<tc>, window_params = [{transform_indices = @transform_0, window_bounds = array<i64: 1, 27, 256>}, {pipeline_mode = #tpu.pipeline_mode<synchronous>, transform_indices = @transform_1, window_bounds = array<i64: 16, 27>}, {pipeline_mode = #tpu.pipeline_mode<synchronous>, transform_indices = @transform_2, window_bounds = array<i64: 16, 1>}, {transform_indices = @transform_3, window_bounds = array<i64: 1, 16, 256>}]} {
    %c0 = arith.constant 0 : index
    %c0_0 = arith.constant 0 : index
    %0 = vector.load %arg3[%c0, %c0_0] : memref<16x27xbf16, #tpu.memory_space<vmem>>, vector<16x27xbf16>
    %c0_1 = arith.constant 0 : index
    %c0_2 = arith.constant 0 : index
    %c0_3 = arith.constant 0 : index
    %1 = vector.load %arg2[%c0_1, %c0_2, %c0_3] : memref<1x27x256xbf16, #tpu.memory_space<vmem>>, vector<1x27x256xbf16>
    %2 = vector.shape_cast %1 : vector<1x27x256xbf16> to vector<27x256xbf16>
    %cst = arith.constant dense<0.000000e+00> : vector<16x256xf32>
    %3 = tpu.matmul %0, %2, %cst {dimension_numbers = #tpu.dot_dimension_numbers<[1], [0], [0], [1], [0, 0, 1, 1], [], []>} : vector<16x27xbf16>, vector<27x256xbf16>, vector<16x256xf32> -> vector<16x256xf32>
    %c0_4 = arith.constant 0 : index
    %c0_5 = arith.constant 0 : index
    %4 = vector.load %arg4[%c0_4, %c0_5] : memref<16x1xf32, #tpu.memory_space<vmem>>, vector<16x1xf32>
    %5 = vector.broadcast %4 : vector<16x1xf32> to vector<16x256xf32>
    %6 = arith.addf %3, %5 : vector<16x256xf32>
    %7 = arith.truncf %6 : vector<16x256xf32> to vector<16x256xbf16>
    %c0_6 = arith.constant 0 : index
    %c0_7 = arith.constant 0 : index
    %c0_8 = arith.constant 0 : index
    %8 = vector.load %arg5[%c0_6, %c0_7, %c0_8] : memref<1x16x256xbf16, #tpu.memory_space<vmem>>, vector<1x16x256xbf16>
    %9 = vector.shape_cast %8 : vector<1x16x256xbf16> to vector<16x256xbf16>
    %10 = vector.shape_cast %7 : vector<16x256xbf16> to vector<1x16x256xbf16>
    tpu.vector_store %arg5[%c0_6, %c0_7, %c0_8], %10 {strides = array<i32>} : memref<1x16x256xbf16, #tpu.memory_space<vmem>>, vector<1x16x256xbf16>,
    return
  }
  func.func @transform_0(%arg0: i32, %arg1: i32) -> (i32, i32, i32) {
    %c0_i32 = arith.constant 0 : i32
    %c0_i32_0 = arith.constant 0 : i32
    return %arg0, %c0_i32, %arg1 : i32, i32, i32
  }
  func.func @transform_1(%arg0: i32, %arg1: i32) -> (i32, i32) {
    %c0_i32 = arith.constant 0 : i32
    %c0_i32_0 = arith.constant 0 : i32
    %c0_i32_1 = arith.constant 0 : i32
    return %c0_i32, %c0_i32_0 : i32, i32
  }
  func.func @transform_2(%arg0: i32, %arg1: i32) -> (i32, i32) {
    %c0_i32 = arith.constant 0 : i32
    %c0_i32_0 = arith.constant 0 : i32
    %c0_i32_1 = arith.constant 0 : i32
    return %c0_i32, %c0_i32_0 : i32, i32
  }
  func.func @transform_3(%arg0: i32, %arg1: i32) -> (i32, i32, i32) {
    %c0_i32 = arith.constant 0 : i32
    %c0_i32_0 = arith.constant 0 : i32
    return %arg0, %c0_i32, %arg1 : i32, i32, i32
  }
}

module attributes {stable_mosaic.version = 11 : i64} {
  func.func @_head1_kernel(%arg0: i32, %arg1: i32, %arg2: memref<1x16x256xbf16, #tpu.memory_space<vmem>>, %arg3: memref<12x16xbf16, #tpu.memory_space<vmem>>, %arg4: memref<12x1xf32, #tpu.memory_space<vmem>>, %arg5: memref<8x16xbf16, #tpu.memory_space<vmem>>, %arg6: memref<8x1xf32, #tpu.memory_space<vmem>>, %arg7: memref<1x8x256xbf16, #tpu.memory_space<vmem>>, %arg8: memref<1x4x256xbf16, #tpu.memory_space<vmem>>, %arg9: memref<1x8x256xbf16, #tpu.memory_space<vmem>>) attributes {dimension_semantics = [#tpu.dimension_semantics<parallel>, #tpu.dimension_semantics<parallel>], iteration_bounds = array<i64: 2, 1>, scalar_prefetch = 0 : i64, scratch_operands = 0 : i64, tpu.core_type = #tpu.core_type<tc>, window_params = [{transform_indices = @transform_0, window_bounds = array<i64: 1, 16, 256>}, {pipeline_mode = #tpu.pipeline_mode<synchronous>, transform_indices = @transform_1, window_bounds = array<i64: 12, 16>}, {pipeline_mode = #tpu.pipeline_mode<synchronous>, transform_indices = @transform_2, window_bounds = array<i64: 12, 1>}, {pipeline_mode = #tpu.pipeline_mode<synchronous>, transform_indices = @transform_3, window_bounds = array<i64: 8, 16>}, {pipeline_mode = #tpu.pipeline_mode<synchronous>, transform_indices = @transform_4, window_bounds = array<i64: 8, 1>}, {transform_indices = @transform_5, window_bounds = array<i64: 1, 8, 256>}, {transform_indices = @transform_6, window_bounds = array<i64: 1, 4, 256>}, {transform_indices = @transform_7, window_bounds = array<i64: 1, 8, 256>}]} {
    %c0 = arith.constant 0 : index
    %c0_0 = arith.constant 0 : index
    %c0_1 = arith.constant 0 : index
    %0 = vector.load %arg2[%c0, %c0_0, %c0_1] : memref<1x16x256xbf16, #tpu.memory_space<vmem>>, vector<1x16x256xbf16>
    %1 = vector.shape_cast %0 : vector<1x16x256xbf16> to vector<16x256xbf16>
    %c0_2 = arith.constant 0 : index
    %c0_3 = arith.constant 0 : index
    %2 = vector.load %arg3[%c0_2, %c0_3] : memref<12x16xbf16, #tpu.memory_space<vmem>>, vector<12x16xbf16>
    %cst = arith.constant dense<0.000000e+00> : vector<12x256xf32>
    %3 = tpu.matmul %2, %1, %cst {dimension_numbers = #tpu.dot_dimension_numbers<[1], [0], [0], [1], [0, 0, 1, 1], [], []>} : vector<12x16xbf16>, vector<16x256xbf16>, vector<12x256xf32> -> vector<12x256xf32>
    %c0_4 = arith.constant 0 : index
    %c0_5 = arith.constant 0 : index
    %4 = vector.load %arg4[%c0_4, %c0_5] : memref<12x1xf32, #tpu.memory_space<vmem>>, vector<12x1xf32>
    %5 = vector.broadcast %4 : vector<12x1xf32> to vector<12x256xf32>
    %6 = arith.addf %3, %5 : vector<12x256xf32>
    %7 = vector.extract_strided_slice %6 {offsets = [0, 0], sizes = [8, 256], strides = [1, 1]} : vector<12x256xf32> to vector<8x256xf32>
    %8 = arith.truncf %7 : vector<8x256xf32> to vector<8x256xbf16>
    %c0_6 = arith.constant 0 : index
    %c0_7 = arith.constant 0 : index
    %c0_8 = arith.constant 0 : index
    %9 = vector.load %arg7[%c0_6, %c0_7, %c0_8] : memref<1x8x256xbf16, #tpu.memory_space<vmem>>, vector<1x8x256xbf16>
    %10 = vector.shape_cast %9 : vector<1x8x256xbf16> to vector<8x256xbf16>
    %11 = vector.shape_cast %8 : vector<8x256xbf16> to vector<1x8x256xbf16>
    tpu.vector_store %arg7[%c0_6, %c0_7, %c0_8], %11 {strides = array<i32>} : memref<1x8x256xbf16, #tpu.memory_space<vmem>>, vector<1x8x256xbf16>,
    %12 = vector.extract_strided_slice %6 {offsets = [8, 0], sizes = [4, 256], strides = [1, 1]} : vector<12x256xf32> to vector<4x256xf32>
    %13 = arith.truncf %12 : vector<4x256xf32> to vector<4x256xbf16>
    %c0_9 = arith.constant 0 : index
    %c0_10 = arith.constant 0 : index
    %c0_11 = arith.constant 0 : index
    %14 = vector.load %arg8[%c0_9, %c0_10, %c0_11] : memref<1x4x256xbf16, #tpu.memory_space<vmem>>, vector<1x4x256xbf16>
    %15 = vector.shape_cast %14 : vector<1x4x256xbf16> to vector<4x256xbf16>
    %16 = vector.shape_cast %13 : vector<4x256xbf16> to vector<1x4x256xbf16>
    tpu.vector_store %arg8[%c0_9, %c0_10, %c0_11], %16 {strides = array<i32>} : memref<1x4x256xbf16, #tpu.memory_space<vmem>>, vector<1x4x256xbf16>,
    %c0_12 = arith.constant 0 : index
    %c0_13 = arith.constant 0 : index
    %17 = vector.load %arg5[%c0_12, %c0_13] : memref<8x16xbf16, #tpu.memory_space<vmem>>, vector<8x16xbf16>
    %cst_14 = arith.constant dense<0.000000e+00> : vector<8x256xf32>
    %18 = tpu.matmul %17, %1, %cst_14 {dimension_numbers = #tpu.dot_dimension_numbers<[1], [0], [0], [1], [0, 0, 1, 1], [], []>} : vector<8x16xbf16>, vector<16x256xbf16>, vector<8x256xf32> -> vector<8x256xf32>
    %c0_15 = arith.constant 0 : index
    %c0_16 = arith.constant 0 : index
    %19 = vector.load %arg6[%c0_15, %c0_16] : memref<8x1xf32, #tpu.memory_space<vmem>>, vector<8x1xf32>
    %20 = vector.broadcast %19 : vector<8x1xf32> to vector<8x256xf32>
    %21 = arith.addf %18, %20 : vector<8x256xf32>
    %cst_17 = arith.constant 0.000000e+00 : f32
    %22 = vector.broadcast %cst_17 : f32 to vector<8x256xf32>
    %23 = arith.maximumf %21, %22 : vector<8x256xf32>
    %24 = arith.truncf %23 : vector<8x256xf32> to vector<8x256xbf16>
    %c0_18 = arith.constant 0 : index
    %c0_19 = arith.constant 0 : index
    %c0_20 = arith.constant 0 : index
    %25 = vector.load %arg9[%c0_18, %c0_19, %c0_20] : memref<1x8x256xbf16, #tpu.memory_space<vmem>>, vector<1x8x256xbf16>
    %26 = vector.shape_cast %25 : vector<1x8x256xbf16> to vector<8x256xbf16>
    %27 = vector.shape_cast %24 : vector<8x256xbf16> to vector<1x8x256xbf16>
    tpu.vector_store %arg9[%c0_18, %c0_19, %c0_20], %27 {strides = array<i32>} : memref<1x8x256xbf16, #tpu.memory_space<vmem>>, vector<1x8x256xbf16>,
    return
  }
  func.func @transform_0(%arg0: i32, %arg1: i32) -> (i32, i32, i32) {
    %c0_i32 = arith.constant 0 : i32
    %c0_i32_0 = arith.constant 0 : i32
    return %arg0, %c0_i32, %arg1 : i32, i32, i32
  }
  func.func @transform_1(%arg0: i32, %arg1: i32) -> (i32, i32) {
    %c0_i32 = arith.constant 0 : i32
    %c0_i32_0 = arith.constant 0 : i32
    %c0_i32_1 = arith.constant 0 : i32
    return %c0_i32, %c0_i32_0 : i32, i32
  }
  func.func @transform_2(%arg0: i32, %arg1: i32) -> (i32, i32) {
    %c0_i32 = arith.constant 0 : i32
    %c0_i32_0 = arith.constant 0 : i32
    %c0_i32_1 = arith.constant 0 : i32
    return %c0_i32, %c0_i32_0 : i32, i32
  }
  func.func @transform_3(%arg0: i32, %arg1: i32) -> (i32, i32) {
    %c0_i32 = arith.constant 0 : i32
    %c0_i32_0 = arith.constant 0 : i32
    %c0_i32_1 = arith.constant 0 : i32
    return %c0_i32, %c0_i32_0 : i32, i32
  }
  func.func @transform_4(%arg0: i32, %arg1: i32) -> (i32, i32) {
    %c0_i32 = arith.constant 0 : i32
    %c0_i32_0 = arith.constant 0 : i32
    %c0_i32_1 = arith.constant 0 : i32
    return %c0_i32, %c0_i32_0 : i32, i32
  }
  func.func @transform_5(%arg0: i32, %arg1: i32) -> (i32, i32, i32) {
    %c0_i32 = arith.constant 0 : i32
    %c0_i32_0 = arith.constant 0 : i32
    return %arg0, %c0_i32, %arg1 : i32, i32, i32
  }
  func.func @transform_6(%arg0: i32, %arg1: i32) -> (i32, i32, i32) {
    %c0_i32 = arith.constant 0 : i32
    %c0_i32_0 = arith.constant 0 : i32
    return %arg0, %c0_i32, %arg1 : i32, i32, i32
  }
  func.func @transform_7(%arg0: i32, %arg1: i32) -> (i32, i32, i32) {
    %c0_i32 = arith.constant 0 : i32
    %c0_i32_0 = arith.constant 0 : i32
    return %arg0, %c0_i32, %arg1 : i32, i32, i32
  }
}

module attributes {stable_mosaic.version = 11 : i64} {
  func.func @_stage2_kernel(%arg0: i32, %arg1: i32, %arg2: memref<1x72x256xbf16, #tpu.memory_space<vmem>>, %arg3: memref<12x72xbf16, #tpu.memory_space<vmem>>, %arg4: memref<12x1xf32, #tpu.memory_space<vmem>>, %arg5: memref<1x8x256xbf16, #tpu.memory_space<vmem>>, %arg6: memref<1x8x256xbf16, #tpu.memory_space<vmem>>, %arg7: memref<1x4x256xbf16, #tpu.memory_space<vmem>>) attributes {dimension_semantics = [#tpu.dimension_semantics<parallel>, #tpu.dimension_semantics<parallel>], iteration_bounds = array<i64: 2, 1>, scalar_prefetch = 0 : i64, scratch_operands = 0 : i64, tpu.core_type = #tpu.core_type<tc>, window_params = [{transform_indices = @transform_0, window_bounds = array<i64: 1, 72, 256>}, {pipeline_mode = #tpu.pipeline_mode<synchronous>, transform_indices = @transform_1, window_bounds = array<i64: 12, 72>}, {pipeline_mode = #tpu.pipeline_mode<synchronous>, transform_indices = @transform_2, window_bounds = array<i64: 12, 1>}, {transform_indices = @transform_3, window_bounds = array<i64: 1, 8, 256>}, {transform_indices = @transform_4, window_bounds = array<i64: 1, 8, 256>}, {transform_indices = @transform_5, window_bounds = array<i64: 1, 4, 256>}]} {
    %c0 = arith.constant 0 : index
    %c0_0 = arith.constant 0 : index
    %0 = vector.load %arg3[%c0, %c0_0] : memref<12x72xbf16, #tpu.memory_space<vmem>>, vector<12x72xbf16>
    %c0_1 = arith.constant 0 : index
    %c0_2 = arith.constant 0 : index
    %c0_3 = arith.constant 0 : index
    %1 = vector.load %arg2[%c0_1, %c0_2, %c0_3] : memref<1x72x256xbf16, #tpu.memory_space<vmem>>, vector<1x72x256xbf16>
    %2 = vector.shape_cast %1 : vector<1x72x256xbf16> to vector<72x256xbf16>
    %cst = arith.constant dense<0.000000e+00> : vector<12x256xf32>
    %3 = tpu.matmul %0, %2, %cst {dimension_numbers = #tpu.dot_dimension_numbers<[1], [0], [0], [1], [0, 0, 1, 1], [], []>} : vector<12x72xbf16>, vector<72x256xbf16>, vector<12x256xf32> -> vector<12x256xf32>
    %c0_4 = arith.constant 0 : index
    %c0_5 = arith.constant 0 : index
    %4 = vector.load %arg4[%c0_4, %c0_5] : memref<12x1xf32, #tpu.memory_space<vmem>>, vector<12x1xf32>
    %5 = vector.broadcast %4 : vector<12x1xf32> to vector<12x256xf32>
    %6 = arith.addf %3, %5 : vector<12x256xf32>
    %7 = vector.extract_strided_slice %6 {offsets = [0, 0], sizes = [8, 256], strides = [1, 1]} : vector<12x256xf32> to vector<8x256xf32>
    %c0_6 = arith.constant 0 : index
    %c0_7 = arith.constant 0 : index
    %c0_8 = arith.constant 0 : index
    %8 = vector.load %arg5[%c0_6, %c0_7, %c0_8] : memref<1x8x256xbf16, #tpu.memory_space<vmem>>, vector<1x8x256xbf16>
    %9 = vector.shape_cast %8 : vector<1x8x256xbf16> to vector<8x256xbf16>
    %10 = arith.extf %9 : vector<8x256xbf16> to vector<8x256xf32>
    %11 = arith.addf %7, %10 : vector<8x256xf32>
    %12 = arith.truncf %11 : vector<8x256xf32> to vector<8x256xbf16>
    %c0_9 = arith.constant 0 : index
    %c0_10 = arith.constant 0 : index
    %c0_11 = arith.constant 0 : index
    %13 = vector.load %arg6[%c0_9, %c0_10, %c0_11] : memref<1x8x256xbf16, #tpu.memory_space<vmem>>, vector<1x8x256xbf16>
    %14 = vector.shape_cast %13 : vector<1x8x256xbf16> to vector<8x256xbf16>
    %15 = vector.shape_cast %12 : vector<8x256xbf16> to vector<1x8x256xbf16>
    tpu.vector_store %arg6[%c0_9, %c0_10, %c0_11], %15 {strides = array<i32>} : memref<1x8x256xbf16, #tpu.memory_space<vmem>>, vector<1x8x256xbf16>,
    %16 = vector.extract_strided_slice %6 {offsets = [8, 0], sizes = [4, 256], strides = [1, 1]} : vector<12x256xf32> to vector<4x256xf32>
    %17 = arith.truncf %16 : vector<4x256xf32> to vector<4x256xbf16>
    %c0_12 = arith.constant 0 : index
    %c0_13 = arith.constant 0 : index
    %c0_14 = arith.constant 0 : index
    %18 = vector.load %arg7[%c0_12, %c0_13, %c0_14] : memref<1x4x256xbf16, #tpu.memory_space<vmem>>, vector<1x4x256xbf16>
    %19 = vector.shape_cast %18 : vector<1x4x256xbf16> to vector<4x256xbf16>
    %20 = vector.shape_cast %17 : vector<4x256xbf16> to vector<1x4x256xbf16>
    tpu.vector_store %arg7[%c0_12, %c0_13, %c0_14], %20 {strides = array<i32>} : memref<1x4x256xbf16, #tpu.memory_space<vmem>>, vector<1x4x256xbf16>,
    return
  }
  func.func @transform_0(%arg0: i32, %arg1: i32) -> (i32, i32, i32) {
    %c0_i32 = arith.constant 0 : i32
    %c0_i32_0 = arith.constant 0 : i32
    return %arg0, %c0_i32, %arg1 : i32, i32, i32
  }
  func.func @transform_1(%arg0: i32, %arg1: i32) -> (i32, i32) {
    %c0_i32 = arith.constant 0 : i32
    %c0_i32_0 = arith.constant 0 : i32
    %c0_i32_1 = arith.constant 0 : i32
    return %c0_i32, %c0_i32_0 : i32, i32
  }
  func.func @transform_2(%arg0: i32, %arg1: i32) -> (i32, i32) {
    %c0_i32 = arith.constant 0 : i32
    %c0_i32_0 = arith.constant 0 : i32
    %c0_i32_1 = arith.constant 0 : i32
    return %c0_i32, %c0_i32_0 : i32, i32
  }
  func.func @transform_3(%arg0: i32, %arg1: i32) -> (i32, i32, i32) {
    %c0_i32 = arith.constant 0 : i32
    %c0_i32_0 = arith.constant 0 : i32
    return %arg0, %c0_i32, %arg1 : i32, i32, i32
  }
  func.func @transform_4(%arg0: i32, %arg1: i32) -> (i32, i32, i32) {
    %c0_i32 = arith.constant 0 : i32
    %c0_i32_0 = arith.constant 0 : i32
    return %arg0, %c0_i32, %arg1 : i32, i32, i32
  }
  func.func @transform_5(%arg0: i32, %arg1: i32) -> (i32, i32, i32) {
    %c0_i32 = arith.constant 0 : i32
    %c0_i32_0 = arith.constant 0 : i32
    return %arg0, %c0_i32, %arg1 : i32, i32, i32
  }
}

module attributes {stable_mosaic.version = 11 : i64} {
  func.func @_body1_kernel(%arg0: i32, %arg1: i32, %arg2: memref<1x8x256xbf16, #tpu.memory_space<vmem>>, %arg3: memref<1x8x256xbf16, #tpu.memory_space<vmem>>, %arg4: memref<8x8xbf16, #tpu.memory_space<vmem>>, %arg5: memref<8x8xbf16, #tpu.memory_space<vmem>>, %arg6: memref<8x1xf32, #tpu.memory_space<vmem>>, %arg7: memref<1x8x256xbf16, #tpu.memory_space<vmem>>) attributes {dimension_semantics = [#tpu.dimension_semantics<parallel>, #tpu.dimension_semantics<parallel>], iteration_bounds = array<i64: 2, 1>, scalar_prefetch = 0 : i64, scratch_operands = 0 : i64, tpu.core_type = #tpu.core_type<tc>, window_params = [{transform_indices = @transform_0, window_bounds = array<i64: 1, 8, 256>}, {transform_indices = @transform_1, window_bounds = array<i64: 1, 8, 256>}, {pipeline_mode = #tpu.pipeline_mode<synchronous>, transform_indices = @transform_2, window_bounds = array<i64: 8, 8>}, {pipeline_mode = #tpu.pipeline_mode<synchronous>, transform_indices = @transform_3, window_bounds = array<i64: 8, 8>}, {pipeline_mode = #tpu.pipeline_mode<synchronous>, transform_indices = @transform_4, window_bounds = array<i64: 8, 1>}, {transform_indices = @transform_5, window_bounds = array<i64: 1, 8, 256>}]} {
    %c0 = arith.constant 0 : index
    %c0_0 = arith.constant 0 : index
    %0 = vector.load %arg4[%c0, %c0_0] : memref<8x8xbf16, #tpu.memory_space<vmem>>, vector<8x8xbf16>
    %c0_1 = arith.constant 0 : index
    %c0_2 = arith.constant 0 : index
    %c0_3 = arith.constant 0 : index
    %1 = vector.load %arg2[%c0_1, %c0_2, %c0_3] : memref<1x8x256xbf16, #tpu.memory_space<vmem>>, vector<1x8x256xbf16>
    %2 = vector.shape_cast %1 : vector<1x8x256xbf16> to vector<8x256xbf16>
    %cst = arith.constant dense<0.000000e+00> : vector<8x256xf32>
    %3 = tpu.matmul %0, %2, %cst {dimension_numbers = #tpu.dot_dimension_numbers<[1], [0], [0], [1], [0, 0, 1, 1], [], []>} : vector<8x8xbf16>, vector<8x256xbf16>, vector<8x256xf32> -> vector<8x256xf32>
    %c0_4 = arith.constant 0 : index
    %c0_5 = arith.constant 0 : index
    %4 = vector.load %arg5[%c0_4, %c0_5] : memref<8x8xbf16, #tpu.memory_space<vmem>>, vector<8x8xbf16>
    %c0_6 = arith.constant 0 : index
    %c0_7 = arith.constant 0 : index
    %c0_8 = arith.constant 0 : index
    %5 = vector.load %arg3[%c0_6, %c0_7, %c0_8] : memref<1x8x256xbf16, #tpu.memory_space<vmem>>, vector<1x8x256xbf16>
    %6 = vector.shape_cast %5 : vector<1x8x256xbf16> to vector<8x256xbf16>
    %cst_9 = arith.constant dense<0.000000e+00> : vector<8x256xf32>
    %7 = tpu.matmul %4, %6, %cst_9 {dimension_numbers = #tpu.dot_dimension_numbers<[1], [0], [0], [1], [0, 0, 1, 1], [], []>} : vector<8x8xbf16>, vector<8x256xbf16>, vector<8x256xf32> -> vector<8x256xf32>
    %8 = arith.addf %3, %7 : vector<8x256xf32>
    %c0_10 = arith.constant 0 : index
    %c0_11 = arith.constant 0 : index
    %9 = vector.load %arg6[%c0_10, %c0_11] : memref<8x1xf32, #tpu.memory_space<vmem>>, vector<8x1xf32>
    %10 = vector.broadcast %9 : vector<8x1xf32> to vector<8x256xf32>
    %11 = arith.addf %8, %10 : vector<8x256xf32>
    %cst_12 = arith.constant 0.000000e+00 : f32
    %12 = vector.broadcast %cst_12 : f32 to vector<8x256xf32>
    %13 = arith.maximumf %11, %12 : vector<8x256xf32>
    %14 = arith.truncf %13 : vector<8x256xf32> to vector<8x256xbf16>
    %c0_13 = arith.constant 0 : index
    %c0_14 = arith.constant 0 : index
    %c0_15 = arith.constant 0 : index
    %15 = vector.load %arg7[%c0_13, %c0_14, %c0_15] : memref<1x8x256xbf16, #tpu.memory_space<vmem>>, vector<1x8x256xbf16>
    %16 = vector.shape_cast %15 : vector<1x8x256xbf16> to vector<8x256xbf16>
    %17 = vector.shape_cast %14 : vector<8x256xbf16> to vector<1x8x256xbf16>
    tpu.vector_store %arg7[%c0_13, %c0_14, %c0_15], %17 {strides = array<i32>} : memref<1x8x256xbf16, #tpu.memory_space<vmem>>, vector<1x8x256xbf16>,
    return
  }
  func.func @transform_0(%arg0: i32, %arg1: i32) -> (i32, i32, i32) {
    %c0_i32 = arith.constant 0 : i32
    %c0_i32_0 = arith.constant 0 : i32
    return %arg0, %c0_i32, %arg1 : i32, i32, i32
  }
  func.func @transform_1(%arg0: i32, %arg1: i32) -> (i32, i32, i32) {
    %c0_i32 = arith.constant 0 : i32
    %c0_i32_0 = arith.constant 0 : i32
    return %arg0, %c0_i32, %arg1 : i32, i32, i32
  }
  func.func @transform_2(%arg0: i32, %arg1: i32) -> (i32, i32) {
    %c0_i32 = arith.constant 0 : i32
    %c0_i32_0 = arith.constant 0 : i32
    %c0_i32_1 = arith.constant 0 : i32
    return %c0_i32, %c0_i32_0 : i32, i32
  }
  func.func @transform_3(%arg0: i32, %arg1: i32) -> (i32, i32) {
    %c0_i32 = arith.constant 0 : i32
    %c0_i32_0 = arith.constant 0 : i32
    %c0_i32_1 = arith.constant 0 : i32
    return %c0_i32, %c0_i32_0 : i32, i32
  }
  func.func @transform_4(%arg0: i32, %arg1: i32) -> (i32, i32) {
    %c0_i32 = arith.constant 0 : i32
    %c0_i32_0 = arith.constant 0 : i32
    %c0_i32_1 = arith.constant 0 : i32
    return %c0_i32, %c0_i32_0 : i32, i32
  }
  func.func @transform_5(%arg0: i32, %arg1: i32) -> (i32, i32, i32) {
    %c0_i32 = arith.constant 0 : i32
    %c0_i32_0 = arith.constant 0 : i32
    return %arg0, %c0_i32, %arg1 : i32, i32, i32
  }
}

module attributes {stable_mosaic.version = 11 : i64} {
  func.func @_body1_kernel(%arg0: i32, %arg1: i32, %arg2: memref<1x8x256xbf16, #tpu.memory_space<vmem>>, %arg3: memref<1x12x256xbf16, #tpu.memory_space<vmem>>, %arg4: memref<8x8xbf16, #tpu.memory_space<vmem>>, %arg5: memref<8x12xbf16, #tpu.memory_space<vmem>>, %arg6: memref<8x1xf32, #tpu.memory_space<vmem>>, %arg7: memref<1x8x256xbf16, #tpu.memory_space<vmem>>) attributes {dimension_semantics = [#tpu.dimension_semantics<parallel>, #tpu.dimension_semantics<parallel>], iteration_bounds = array<i64: 2, 1>, scalar_prefetch = 0 : i64, scratch_operands = 0 : i64, tpu.core_type = #tpu.core_type<tc>, window_params = [{transform_indices = @transform_0, window_bounds = array<i64: 1, 8, 256>}, {transform_indices = @transform_1, window_bounds = array<i64: 1, 12, 256>}, {pipeline_mode = #tpu.pipeline_mode<synchronous>, transform_indices = @transform_2, window_bounds = array<i64: 8, 8>}, {pipeline_mode = #tpu.pipeline_mode<synchronous>, transform_indices = @transform_3, window_bounds = array<i64: 8, 12>}, {pipeline_mode = #tpu.pipeline_mode<synchronous>, transform_indices = @transform_4, window_bounds = array<i64: 8, 1>}, {transform_indices = @transform_5, window_bounds = array<i64: 1, 8, 256>}]} {
    %c0 = arith.constant 0 : index
    %c0_0 = arith.constant 0 : index
    %0 = vector.load %arg4[%c0, %c0_0] : memref<8x8xbf16, #tpu.memory_space<vmem>>, vector<8x8xbf16>
    %c0_1 = arith.constant 0 : index
    %c0_2 = arith.constant 0 : index
    %c0_3 = arith.constant 0 : index
    %1 = vector.load %arg2[%c0_1, %c0_2, %c0_3] : memref<1x8x256xbf16, #tpu.memory_space<vmem>>, vector<1x8x256xbf16>
    %2 = vector.shape_cast %1 : vector<1x8x256xbf16> to vector<8x256xbf16>
    %cst = arith.constant dense<0.000000e+00> : vector<8x256xf32>
    %3 = tpu.matmul %0, %2, %cst {dimension_numbers = #tpu.dot_dimension_numbers<[1], [0], [0], [1], [0, 0, 1, 1], [], []>} : vector<8x8xbf16>, vector<8x256xbf16>, vector<8x256xf32> -> vector<8x256xf32>
    %c0_4 = arith.constant 0 : index
    %c0_5 = arith.constant 0 : index
    %4 = vector.load %arg5[%c0_4, %c0_5] : memref<8x12xbf16, #tpu.memory_space<vmem>>, vector<8x12xbf16>
    %c0_6 = arith.constant 0 : index
    %c0_7 = arith.constant 0 : index
    %c0_8 = arith.constant 0 : index
    %5 = vector.load %arg3[%c0_6, %c0_7, %c0_8] : memref<1x12x256xbf16, #tpu.memory_space<vmem>>, vector<1x12x256xbf16>
    %6 = vector.shape_cast %5 : vector<1x12x256xbf16> to vector<12x256xbf16>
    %cst_9 = arith.constant dense<0.000000e+00> : vector<8x256xf32>
    %7 = tpu.matmul %4, %6, %cst_9 {dimension_numbers = #tpu.dot_dimension_numbers<[1], [0], [0], [1], [0, 0, 1, 1], [], []>} : vector<8x12xbf16>, vector<12x256xbf16>, vector<8x256xf32> -> vector<8x256xf32>
    %8 = arith.addf %3, %7 : vector<8x256xf32>
    %c0_10 = arith.constant 0 : index
    %c0_11 = arith.constant 0 : index
    %9 = vector.load %arg6[%c0_10, %c0_11] : memref<8x1xf32, #tpu.memory_space<vmem>>, vector<8x1xf32>
    %10 = vector.broadcast %9 : vector<8x1xf32> to vector<8x256xf32>
    %11 = arith.addf %8, %10 : vector<8x256xf32>
    %cst_12 = arith.constant 0.000000e+00 : f32
    %12 = vector.broadcast %cst_12 : f32 to vector<8x256xf32>
    %13 = arith.maximumf %11, %12 : vector<8x256xf32>
    %14 = arith.truncf %13 : vector<8x256xf32> to vector<8x256xbf16>
    %c0_13 = arith.constant 0 : index
    %c0_14 = arith.constant 0 : index
    %c0_15 = arith.constant 0 : index
    %15 = vector.load %arg7[%c0_13, %c0_14, %c0_15] : memref<1x8x256xbf16, #tpu.memory_space<vmem>>, vector<1x8x256xbf16>
    %16 = vector.shape_cast %15 : vector<1x8x256xbf16> to vector<8x256xbf16>
    %17 = vector.shape_cast %14 : vector<8x256xbf16> to vector<1x8x256xbf16>
    tpu.vector_store %arg7[%c0_13, %c0_14, %c0_15], %17 {strides = array<i32>} : memref<1x8x256xbf16, #tpu.memory_space<vmem>>, vector<1x8x256xbf16>,
    return
  }
  func.func @transform_0(%arg0: i32, %arg1: i32) -> (i32, i32, i32) {
    %c0_i32 = arith.constant 0 : i32
    %c0_i32_0 = arith.constant 0 : i32
    return %arg0, %c0_i32, %arg1 : i32, i32, i32
  }
  func.func @transform_1(%arg0: i32, %arg1: i32) -> (i32, i32, i32) {
    %c0_i32 = arith.constant 0 : i32
    %c0_i32_0 = arith.constant 0 : i32
    return %arg0, %c0_i32, %arg1 : i32, i32, i32
  }
  func.func @transform_2(%arg0: i32, %arg1: i32) -> (i32, i32) {
    %c0_i32 = arith.constant 0 : i32
    %c0_i32_0 = arith.constant 0 : i32
    %c0_i32_1 = arith.constant 0 : i32
    return %c0_i32, %c0_i32_0 : i32, i32
  }
  func.func @transform_3(%arg0: i32, %arg1: i32) -> (i32, i32) {
    %c0_i32 = arith.constant 0 : i32
    %c0_i32_0 = arith.constant 0 : i32
    %c0_i32_1 = arith.constant 0 : i32
    return %c0_i32, %c0_i32_0 : i32, i32
  }
  func.func @transform_4(%arg0: i32, %arg1: i32) -> (i32, i32) {
    %c0_i32 = arith.constant 0 : i32
    %c0_i32_0 = arith.constant 0 : i32
    %c0_i32_1 = arith.constant 0 : i32
    return %c0_i32, %c0_i32_0 : i32, i32
  }
  func.func @transform_5(%arg0: i32, %arg1: i32) -> (i32, i32, i32) {
    %c0_i32 = arith.constant 0 : i32
    %c0_i32_0 = arith.constant 0 : i32
    return %arg0, %c0_i32, %arg1 : i32, i32, i32
  }
}

module attributes {stable_mosaic.version = 11 : i64} {
  func.func @_paf_kernel(%arg0: i32, %arg1: i32, %arg2: memref<1x1xf32, #tpu.memory_space<vmem>>, %arg3: memref<1x8x256xbf16, #tpu.memory_space<vmem>>, %arg4: memref<1x16x256xbf16, #tpu.memory_space<vmem>>, %arg5: memref<1x8x1xf32, #tpu.memory_space<vmem>>, %arg6: memref<1x16x1xf32, #tpu.memory_space<vmem>>, %arg7: memref<16x8xbf16, #tpu.memory_space<vmem>>, %arg8: memref<16x16xbf16, #tpu.memory_space<vmem>>, %arg9: memref<16x1xf32, #tpu.memory_space<vmem>>, %arg10: memref<1x16x256xbf16, #tpu.memory_space<vmem>>, %arg11: memref<1x16x256xbf16, #tpu.memory_space<vmem>>, %arg12: memref<1x16x256xbf16, #tpu.memory_space<vmem>>) attributes {dimension_semantics = [#tpu.dimension_semantics<parallel>, #tpu.dimension_semantics<parallel>], iteration_bounds = array<i64: 2, 1>, scalar_prefetch = 0 : i64, scratch_operands = 0 : i64, tpu.core_type = #tpu.core_type<tc>, window_params = [{pipeline_mode = #tpu.pipeline_mode<synchronous>, transform_indices = @transform_0, window_bounds = array<i64: 1, 1>}, {transform_indices = @transform_1, window_bounds = array<i64: 1, 8, 256>}, {transform_indices = @transform_2, window_bounds = array<i64: 1, 16, 256>}, {transform_indices = @transform_3, window_bounds = array<i64: 1, 8, 1>}, {transform_indices = @transform_4, window_bounds = array<i64: 1, 16, 1>}, {pipeline_mode = #tpu.pipeline_mode<synchronous>, transform_indices = @transform_5, window_bounds = array<i64: 16, 8>}, {pipeline_mode = #tpu.pipeline_mode<synchronous>, transform_indices = @transform_6, window_bounds = array<i64: 16, 16>}, {pipeline_mode = #tpu.pipeline_mode<synchronous>, transform_indices = @transform_7, window_bounds = array<i64: 16, 1>}, {transform_indices = @transform_8, window_bounds = array<i64: 1, 16, 256>}, {transform_indices = @transform_9, window_bounds = array<i64: 1, 16, 256>}, {transform_indices = @transform_10, window_bounds = array<i64: 1, 16, 256>}]} {
    %c0 = arith.constant 0 : index
    %c0_0 = arith.constant 0 : index
    %c0_1 = arith.constant 0 : index
    %0 = vector.load %arg3[%c0, %c0_0, %c0_1] : memref<1x8x256xbf16, #tpu.memory_space<vmem>>, vector<1x8x256xbf16>
    %1 = vector.shape_cast %0 : vector<1x8x256xbf16> to vector<8x256xbf16>
    %2 = arith.extf %1 : vector<8x256xbf16> to vector<8x256xf32>
    %c0_2 = arith.constant 0 : index
    %c0_3 = arith.constant 0 : index
    %c0_4 = arith.constant 0 : index
    %3 = vector.load %arg5[%c0_2, %c0_3, %c0_4] : memref<1x8x1xf32, #tpu.memory_space<vmem>>, vector<1x8x1xf32>
    %4 = vector.shape_cast %3 : vector<1x8x1xf32> to vector<8x1xf32>
    %5 = vector.broadcast %4 : vector<8x1xf32> to vector<8x256xf32>
    %6 = arith.mulf %2, %5 : vector<8x256xf32>
    %7 = arith.truncf %6 : vector<8x256xf32> to vector<8x256xbf16>
    %c0_5 = arith.constant 0 : index
    %c0_6 = arith.constant 0 : index
    %c0_7 = arith.constant 0 : index
    %8 = vector.load %arg4[%c0_5, %c0_6, %c0_7] : memref<1x16x256xbf16, #tpu.memory_space<vmem>>, vector<1x16x256xbf16>
    %9 = vector.shape_cast %8 : vector<1x16x256xbf16> to vector<16x256xbf16>
    %10 = arith.extf %9 : vector<16x256xbf16> to vector<16x256xf32>
    %c0_8 = arith.constant 0 : index
    %c0_9 = arith.constant 0 : index
    %c0_10 = arith.constant 0 : index
    %11 = vector.load %arg6[%c0_8, %c0_9, %c0_10] : memref<1x16x1xf32, #tpu.memory_space<vmem>>, vector<1x16x1xf32>
    %12 = vector.shape_cast %11 : vector<1x16x1xf32> to vector<16x1xf32>
    %13 = vector.broadcast %12 : vector<16x1xf32> to vector<16x256xf32>
    %14 = arith.mulf %10, %13 : vector<16x256xf32>
    %15 = arith.truncf %14 : vector<16x256xf32> to vector<16x256xbf16>
    %c0_11 = arith.constant 0 : index
    %c0_12 = arith.constant 0 : index
    %16 = vector.load %arg7[%c0_11, %c0_12] : memref<16x8xbf16, #tpu.memory_space<vmem>>, vector<16x8xbf16>
    %cst = arith.constant dense<0.000000e+00> : vector<16x256xf32>
    %17 = tpu.matmul %16, %7, %cst {dimension_numbers = #tpu.dot_dimension_numbers<[1], [0], [0], [1], [0, 0, 1, 1], [], []>} : vector<16x8xbf16>, vector<8x256xbf16>, vector<16x256xf32> -> vector<16x256xf32>
    %c0_13 = arith.constant 0 : index
    %c0_14 = arith.constant 0 : index
    %18 = vector.load %arg8[%c0_13, %c0_14] : memref<16x16xbf16, #tpu.memory_space<vmem>>, vector<16x16xbf16>
    %cst_15 = arith.constant dense<0.000000e+00> : vector<16x256xf32>
    %19 = tpu.matmul %18, %15, %cst_15 {dimension_numbers = #tpu.dot_dimension_numbers<[1], [0], [0], [1], [0, 0, 1, 1], [], []>} : vector<16x16xbf16>, vector<16x256xbf16>, vector<16x256xf32> -> vector<16x256xf32>
    %20 = arith.addf %17, %19 : vector<16x256xf32>
    %c0_16 = arith.constant 0 : index
    %c0_17 = arith.constant 0 : index
    %21 = vector.load %arg9[%c0_16, %c0_17] : memref<16x1xf32, #tpu.memory_space<vmem>>, vector<16x1xf32>
    %22 = vector.broadcast %21 : vector<16x1xf32> to vector<16x256xf32>
    %23 = arith.addf %20, %22 : vector<16x256xf32>
    %c0_18 = arith.constant 0 : index
    %c0_19 = arith.constant 0 : index
    %c0_20 = arith.constant 0 : index
    %24 = vector.load %arg10[%c0_18, %c0_19, %c0_20] : memref<1x16x256xbf16, #tpu.memory_space<vmem>>, vector<1x16x256xbf16>
    %25 = vector.shape_cast %24 : vector<1x16x256xbf16> to vector<16x256xbf16>
    %26 = arith.extf %25 : vector<16x256xbf16> to vector<16x256xf32>
    %27 = arith.addf %23, %26 : vector<16x256xf32>
    %c0_21 = arith.constant 0 : index
    %c0_22 = arith.constant 0 : index
    %28 = vector.load %arg2[%c0_21, %c0_22] : memref<1x1xf32, #tpu.memory_space<vmem>>, vector<1x1xf32>
    %c0_23 = arith.constant 0 : index
    %c0_24 = arith.constant 0 : index
    %c0_25 = arith.constant 0 : index
    %29 = vector.load %arg11[%c0_23, %c0_24, %c0_25] : memref<1x16x256xbf16, #tpu.memory_space<vmem>>, vector<1x16x256xbf16>
    %30 = vector.shape_cast %29 : vector<1x16x256xbf16> to vector<16x256xbf16>
    %31 = arith.extf %30 : vector<16x256xbf16> to vector<16x256xf32>
    %32 = vector.broadcast %28 : vector<1x1xf32> to vector<16x256xf32>
    %33 = arith.mulf %32, %31 : vector<16x256xf32>
    %34 = arith.addf %27, %33 : vector<16x256xf32>
    %35 = arith.truncf %34 : vector<16x256xf32> to vector<16x256xbf16>
    %c0_26 = arith.constant 0 : index
    %c0_27 = arith.constant 0 : index
    %c0_28 = arith.constant 0 : index
    %36 = vector.load %arg12[%c0_26, %c0_27, %c0_28] : memref<1x16x256xbf16, #tpu.memory_space<vmem>>, vector<1x16x256xbf16>
    %37 = vector.shape_cast %36 : vector<1x16x256xbf16> to vector<16x256xbf16>
    %38 = vector.shape_cast %35 : vector<16x256xbf16> to vector<1x16x256xbf16>
    tpu.vector_store %arg12[%c0_26, %c0_27, %c0_28], %38 {strides = array<i32>} : memref<1x16x256xbf16, #tpu.memory_space<vmem>>, vector<1x16x256xbf16>,
    return
  }
  func.func @transform_0(%arg0: i32, %arg1: i32) -> (i32, i32) {
    %c0_i32 = arith.constant 0 : i32
    %c0_i32_0 = arith.constant 0 : i32
    %c0_i32_1 = arith.constant 0 : i32
    return %c0_i32, %c0_i32_0 : i32, i32
  }
  func.func @transform_1(%arg0: i32, %arg1: i32) -> (i32, i32, i32) {
    %c0_i32 = arith.constant 0 : i32
    %c0_i32_0 = arith.constant 0 : i32
    return %arg0, %c0_i32, %arg1 : i32, i32, i32
  }
  func.func @transform_2(%arg0: i32, %arg1: i32) -> (i32, i32, i32) {
    %c0_i32 = arith.constant 0 : i32
    %c0_i32_0 = arith.constant 0 : i32
    return %arg0, %c0_i32, %arg1 : i32, i32, i32
  }
  func.func @transform_3(%arg0: i32, %arg1: i32) -> (i32, i32, i32) {
    %c0_i32 = arith.constant 0 : i32
    %c0_i32_0 = arith.constant 0 : i32
    %c0_i32_1 = arith.constant 0 : i32
    return %arg0, %c0_i32, %c0_i32_0 : i32, i32, i32
  }
  func.func @transform_4(%arg0: i32, %arg1: i32) -> (i32, i32, i32) {
    %c0_i32 = arith.constant 0 : i32
    %c0_i32_0 = arith.constant 0 : i32
    %c0_i32_1 = arith.constant 0 : i32
    return %arg0, %c0_i32, %c0_i32_0 : i32, i32, i32
  }
  func.func @transform_5(%arg0: i32, %arg1: i32) -> (i32, i32) {
    %c0_i32 = arith.constant 0 : i32
    %c0_i32_0 = arith.constant 0 : i32
    %c0_i32_1 = arith.constant 0 : i32
    return %c0_i32, %c0_i32_0 : i32, i32
  }
  func.func @transform_6(%arg0: i32, %arg1: i32) -> (i32, i32) {
    %c0_i32 = arith.constant 0 : i32
    %c0_i32_0 = arith.constant 0 : i32
    %c0_i32_1 = arith.constant 0 : i32
    return %c0_i32, %c0_i32_0 : i32, i32
  }
  func.func @transform_7(%arg0: i32, %arg1: i32) -> (i32, i32) {
    %c0_i32 = arith.constant 0 : i32
    %c0_i32_0 = arith.constant 0 : i32
    %c0_i32_1 = arith.constant 0 : i32
    return %c0_i32, %c0_i32_0 : i32, i32
  }
  func.func @transform_8(%arg0: i32, %arg1: i32) -> (i32, i32, i32) {
    %c0_i32 = arith.constant 0 : i32
    %c0_i32_0 = arith.constant 0 : i32
    return %arg0, %c0_i32, %arg1 : i32, i32, i32
  }
  func.func @transform_9(%arg0: i32, %arg1: i32) -> (i32, i32, i32) {
    %c0_i32 = arith.constant 0 : i32
    %c0_i32_0 = arith.constant 0 : i32
    return %arg0, %c0_i32, %arg1 : i32, i32, i32
  }
  func.func @transform_10(%arg0: i32, %arg1: i32) -> (i32, i32, i32) {
    %c0_i32 = arith.constant 0 : i32
    %c0_i32_0 = arith.constant 0 : i32
    return %arg0, %c0_i32, %arg1 : i32, i32, i32
  }
}

module attributes {stable_mosaic.version = 11 : i64} {
  func.func @_conv_res_kernel(%arg0: i32, %arg1: i32, %arg2: memref<1x144x256xbf16, #tpu.memory_space<vmem>>, %arg3: memref<16x144xbf16, #tpu.memory_space<vmem>>, %arg4: memref<16x1xf32, #tpu.memory_space<vmem>>, %arg5: memref<1x16x256xbf16, #tpu.memory_space<vmem>>, %arg6: memref<1x16x256xbf16, #tpu.memory_space<vmem>>) attributes {dimension_semantics = [#tpu.dimension_semantics<parallel>, #tpu.dimension_semantics<parallel>], iteration_bounds = array<i64: 2, 1>, scalar_prefetch = 0 : i64, scratch_operands = 0 : i64, tpu.core_type = #tpu.core_type<tc>, window_params = [{transform_indices = @transform_0, window_bounds = array<i64: 1, 144, 256>}, {pipeline_mode = #tpu.pipeline_mode<synchronous>, transform_indices = @transform_1, window_bounds = array<i64: 16, 144>}, {pipeline_mode = #tpu.pipeline_mode<synchronous>, transform_indices = @transform_2, window_bounds = array<i64: 16, 1>}, {transform_indices = @transform_3, window_bounds = array<i64: 1, 16, 256>}, {transform_indices = @transform_4, window_bounds = array<i64: 1, 16, 256>}]} {
    %c0 = arith.constant 0 : index
    %c0_0 = arith.constant 0 : index
    %0 = vector.load %arg3[%c0, %c0_0] : memref<16x144xbf16, #tpu.memory_space<vmem>>, vector<16x144xbf16>
    %c0_1 = arith.constant 0 : index
    %c0_2 = arith.constant 0 : index
    %c0_3 = arith.constant 0 : index
    %1 = vector.load %arg2[%c0_1, %c0_2, %c0_3] : memref<1x144x256xbf16, #tpu.memory_space<vmem>>, vector<1x144x256xbf16>
    %2 = vector.shape_cast %1 : vector<1x144x256xbf16> to vector<144x256xbf16>
    %cst = arith.constant dense<0.000000e+00> : vector<16x256xf32>
    %3 = tpu.matmul %0, %2, %cst {dimension_numbers = #tpu.dot_dimension_numbers<[1], [0], [0], [1], [0, 0, 1, 1], [], []>} : vector<16x144xbf16>, vector<144x256xbf16>, vector<16x256xf32> -> vector<16x256xf32>
    %c0_4 = arith.constant 0 : index
    %c0_5 = arith.constant 0 : index
    %4 = vector.load %arg4[%c0_4, %c0_5] : memref<16x1xf32, #tpu.memory_space<vmem>>, vector<16x1xf32>
    %5 = vector.broadcast %4 : vector<16x1xf32> to vector<16x256xf32>
    %6 = arith.addf %3, %5 : vector<16x256xf32>
    %c0_6 = arith.constant 0 : index
    %c0_7 = arith.constant 0 : index
    %c0_8 = arith.constant 0 : index
    %7 = vector.load %arg5[%c0_6, %c0_7, %c0_8] : memref<1x16x256xbf16, #tpu.memory_space<vmem>>, vector<1x16x256xbf16>
    %8 = vector.shape_cast %7 : vector<1x16x256xbf16> to vector<16x256xbf16>
    %9 = arith.extf %8 : vector<16x256xbf16> to vector<16x256xf32>
    %10 = arith.addf %6, %9 : vector<16x256xf32>
    %11 = arith.truncf %10 : vector<16x256xf32> to vector<16x256xbf16>
    %c0_9 = arith.constant 0 : index
    %c0_10 = arith.constant 0 : index
    %c0_11 = arith.constant 0 : index
    %12 = vector.load %arg6[%c0_9, %c0_10, %c0_11] : memref<1x16x256xbf16, #tpu.memory_space<vmem>>, vector<1x16x256xbf16>
    %13 = vector.shape_cast %12 : vector<1x16x256xbf16> to vector<16x256xbf16>
    %14 = vector.shape_cast %11 : vector<16x256xbf16> to vector<1x16x256xbf16>
    tpu.vector_store %arg6[%c0_9, %c0_10, %c0_11], %14 {strides = array<i32>} : memref<1x16x256xbf16, #tpu.memory_space<vmem>>, vector<1x16x256xbf16>,
    return
  }
  func.func @transform_0(%arg0: i32, %arg1: i32) -> (i32, i32, i32) {
    %c0_i32 = arith.constant 0 : i32
    %c0_i32_0 = arith.constant 0 : i32
    return %arg0, %c0_i32, %arg1 : i32, i32, i32
  }
  func.func @transform_1(%arg0: i32, %arg1: i32) -> (i32, i32) {
    %c0_i32 = arith.constant 0 : i32
    %c0_i32_0 = arith.constant 0 : i32
    %c0_i32_1 = arith.constant 0 : i32
    return %c0_i32, %c0_i32_0 : i32, i32
  }
  func.func @transform_2(%arg0: i32, %arg1: i32) -> (i32, i32) {
    %c0_i32 = arith.constant 0 : i32
    %c0_i32_0 = arith.constant 0 : i32
    %c0_i32_1 = arith.constant 0 : i32
    return %c0_i32, %c0_i32_0 : i32, i32
  }
  func.func @transform_3(%arg0: i32, %arg1: i32) -> (i32, i32, i32) {
    %c0_i32 = arith.constant 0 : i32
    %c0_i32_0 = arith.constant 0 : i32
    return %arg0, %c0_i32, %arg1 : i32, i32, i32
  }
  func.func @transform_4(%arg0: i32, %arg1: i32) -> (i32, i32, i32) {
    %c0_i32 = arith.constant 0 : i32
    %c0_i32_0 = arith.constant 0 : i32
    return %arg0, %c0_i32, %arg1 : i32, i32, i32
  }
}

module attributes {stable_mosaic.version = 11 : i64} {
  func.func @_conv_kernel(%arg0: i32, %arg1: i32, %arg2: memref<1x144x256xbf16, #tpu.memory_space<vmem>>, %arg3: memref<64x144xbf16, #tpu.memory_space<vmem>>, %arg4: memref<64x1xf32, #tpu.memory_space<vmem>>, %arg5: memref<1x64x256xbf16, #tpu.memory_space<vmem>>) attributes {dimension_semantics = [#tpu.dimension_semantics<parallel>, #tpu.dimension_semantics<parallel>], iteration_bounds = array<i64: 2, 1>, scalar_prefetch = 0 : i64, scratch_operands = 0 : i64, tpu.core_type = #tpu.core_type<tc>, window_params = [{transform_indices = @transform_0, window_bounds = array<i64: 1, 144, 256>}, {pipeline_mode = #tpu.pipeline_mode<synchronous>, transform_indices = @transform_1, window_bounds = array<i64: 64, 144>}, {pipeline_mode = #tpu.pipeline_mode<synchronous>, transform_indices = @transform_2, window_bounds = array<i64: 64, 1>}, {transform_indices = @transform_3, window_bounds = array<i64: 1, 64, 256>}]} {
    %c0 = arith.constant 0 : index
    %c0_0 = arith.constant 0 : index
    %0 = vector.load %arg3[%c0, %c0_0] : memref<64x144xbf16, #tpu.memory_space<vmem>>, vector<64x144xbf16>
    %c0_1 = arith.constant 0 : index
    %c0_2 = arith.constant 0 : index
    %c0_3 = arith.constant 0 : index
    %1 = vector.load %arg2[%c0_1, %c0_2, %c0_3] : memref<1x144x256xbf16, #tpu.memory_space<vmem>>, vector<1x144x256xbf16>
    %2 = vector.shape_cast %1 : vector<1x144x256xbf16> to vector<144x256xbf16>
    %cst = arith.constant dense<0.000000e+00> : vector<64x256xf32>
    %3 = tpu.matmul %0, %2, %cst {dimension_numbers = #tpu.dot_dimension_numbers<[1], [0], [0], [1], [0, 0, 1, 1], [], []>} : vector<64x144xbf16>, vector<144x256xbf16>, vector<64x256xf32> -> vector<64x256xf32>
    %c0_4 = arith.constant 0 : index
    %c0_5 = arith.constant 0 : index
    %4 = vector.load %arg4[%c0_4, %c0_5] : memref<64x1xf32, #tpu.memory_space<vmem>>, vector<64x1xf32>
    %5 = vector.broadcast %4 : vector<64x1xf32> to vector<64x256xf32>
    %6 = arith.addf %3, %5 : vector<64x256xf32>
    %7 = arith.truncf %6 : vector<64x256xf32> to vector<64x256xbf16>
    %c0_6 = arith.constant 0 : index
    %c0_7 = arith.constant 0 : index
    %c0_8 = arith.constant 0 : index
    %8 = vector.load %arg5[%c0_6, %c0_7, %c0_8] : memref<1x64x256xbf16, #tpu.memory_space<vmem>>, vector<1x64x256xbf16>
    %9 = vector.shape_cast %8 : vector<1x64x256xbf16> to vector<64x256xbf16>
    %10 = vector.shape_cast %7 : vector<64x256xbf16> to vector<1x64x256xbf16>
    tpu.vector_store %arg5[%c0_6, %c0_7, %c0_8], %10 {strides = array<i32>} : memref<1x64x256xbf16, #tpu.memory_space<vmem>>, vector<1x64x256xbf16>,
    return
  }
  func.func @transform_0(%arg0: i32, %arg1: i32) -> (i32, i32, i32) {
    %c0_i32 = arith.constant 0 : i32
    %c0_i32_0 = arith.constant 0 : i32
    return %arg0, %c0_i32, %arg1 : i32, i32, i32
  }
  func.func @transform_1(%arg0: i32, %arg1: i32) -> (i32, i32) {
    %c0_i32 = arith.constant 0 : i32
    %c0_i32_0 = arith.constant 0 : i32
    %c0_i32_1 = arith.constant 0 : i32
    return %c0_i32, %c0_i32_0 : i32, i32
  }
  func.func @transform_2(%arg0: i32, %arg1: i32) -> (i32, i32) {
    %c0_i32 = arith.constant 0 : i32
    %c0_i32_0 = arith.constant 0 : i32
    %c0_i32_1 = arith.constant 0 : i32
    return %c0_i32, %c0_i32_0 : i32, i32
  }
  func.func @transform_3(%arg0: i32, %arg1: i32) -> (i32, i32, i32) {
    %c0_i32 = arith.constant 0 : i32
    %c0_i32_0 = arith.constant 0 : i32
    return %arg0, %c0_i32, %arg1 : i32, i32, i32
  }
}

module attributes {stable_mosaic.version = 11 : i64} {
  func.func @_conv_kernel(%arg0: i32, %arg1: i32, %arg2: memref<1x144x1024xbf16, #tpu.memory_space<vmem>>, %arg3: memref<3x144xbf16, #tpu.memory_space<vmem>>, %arg4: memref<3x1xf32, #tpu.memory_space<vmem>>, %arg5: memref<1x3x1024xbf16, #tpu.memory_space<vmem>>) attributes {dimension_semantics = [#tpu.dimension_semantics<parallel>, #tpu.dimension_semantics<parallel>], iteration_bounds = array<i64: 2, 1>, scalar_prefetch = 0 : i64, scratch_operands = 0 : i64, tpu.core_type = #tpu.core_type<tc>, window_params = [{transform_indices = @transform_0, window_bounds = array<i64: 1, 144, 1024>}, {pipeline_mode = #tpu.pipeline_mode<synchronous>, transform_indices = @transform_1, window_bounds = array<i64: 3, 144>}, {pipeline_mode = #tpu.pipeline_mode<synchronous>, transform_indices = @transform_2, window_bounds = array<i64: 3, 1>}, {transform_indices = @transform_3, window_bounds = array<i64: 1, 3, 1024>}]} {
    %c0 = arith.constant 0 : index
    %c0_0 = arith.constant 0 : index
    %0 = vector.load %arg3[%c0, %c0_0] : memref<3x144xbf16, #tpu.memory_space<vmem>>, vector<3x144xbf16>
    %c0_1 = arith.constant 0 : index
    %c0_2 = arith.constant 0 : index
    %c0_3 = arith.constant 0 : index
    %1 = vector.load %arg2[%c0_1, %c0_2, %c0_3] : memref<1x144x1024xbf16, #tpu.memory_space<vmem>>, vector<1x144x1024xbf16>
    %2 = vector.shape_cast %1 : vector<1x144x1024xbf16> to vector<144x1024xbf16>
    %cst = arith.constant dense<0.000000e+00> : vector<3x1024xf32>
    %3 = tpu.matmul %0, %2, %cst {dimension_numbers = #tpu.dot_dimension_numbers<[1], [0], [0], [1], [0, 0, 1, 1], [], []>} : vector<3x144xbf16>, vector<144x1024xbf16>, vector<3x1024xf32> -> vector<3x1024xf32>
    %c0_4 = arith.constant 0 : index
    %c0_5 = arith.constant 0 : index
    %4 = vector.load %arg4[%c0_4, %c0_5] : memref<3x1xf32, #tpu.memory_space<vmem>>, vector<3x1xf32>
    %5 = vector.broadcast %4 : vector<3x1xf32> to vector<3x1024xf32>
    %6 = arith.addf %3, %5 : vector<3x1024xf32>
    %7 = arith.truncf %6 : vector<3x1024xf32> to vector<3x1024xbf16>
    %c0_6 = arith.constant 0 : index
    %c0_7 = arith.constant 0 : index
    %c0_8 = arith.constant 0 : index
    %8 = vector.load %arg5[%c0_6, %c0_7, %c0_8] : memref<1x3x1024xbf16, #tpu.memory_space<vmem>>, vector<1x3x1024xbf16>
    %9 = vector.shape_cast %8 : vector<1x3x1024xbf16> to vector<3x1024xbf16>
    %10 = vector.shape_cast %7 : vector<3x1024xbf16> to vector<1x3x1024xbf16>
    tpu.vector_store %arg5[%c0_6, %c0_7, %c0_8], %10 {strides = array<i32>} : memref<1x3x1024xbf16, #tpu.memory_space<vmem>>, vector<1x3x1024xbf16>,
    return
  }
  func.func @transform_0(%arg0: i32, %arg1: i32) -> (i32, i32, i32) {
    %c0_i32 = arith.constant 0 : i32
    %c0_i32_0 = arith.constant 0 : i32
    return %arg0, %c0_i32, %arg1 : i32, i32, i32
  }
  func.func @transform_1(%arg0: i32, %arg1: i32) -> (i32, i32) {
    %c0_i32 = arith.constant 0 : i32
    %c0_i32_0 = arith.constant 0 : i32
    %c0_i32_1 = arith.constant 0 : i32
    return %c0_i32, %c0_i32_0 : i32, i32
  }
  func.func @transform_2(%arg0: i32, %arg1: i32) -> (i32, i32) {
    %c0_i32 = arith.constant 0 : i32
    %c0_i32_0 = arith.constant 0 : i32
    %c0_i32_1 = arith.constant 0 : i32
    return %c0_i32, %c0_i32_0 : i32, i32
  }
  func.func @transform_3(%arg0: i32, %arg1: i32) -> (i32, i32, i32) {
    %c0_i32 = arith.constant 0 : i32
    %c0_i32_0 = arith.constant 0 : i32
    return %arg0, %c0_i32, %arg1 : i32, i32, i32
  }
}

</mosaic_0001>

<bundles_post_ra>
// kernel: model_forward.18
= control target key start
LH: loop header
LB: loop body
LE: loop exit
PB: predicated region body
PF: predicated region fallthrough
CT: control target
= control target key end

     0   :  { %s513_s12 = smov 0   ;;  %s515_s13 = smov 0   ;;  %s559_s0 = inlined_call_operand.vmem [shape: bf16[2,27,256], index: 0, kind: input, shape index: {}]   ;;  %s560_s1 = inlined_call_operand.vmem [shape: bf16[16,27], index: 1, kind: input, shape index: {}]   ;;  %s561_s2 = inlined_call_operand.vmem [shape: f32[16,1], index: 2, kind: input, shape index: {}]   ;;  %s562_s3 = inlined_call_operand.vmem [shape: bf16[2,16,256], index: 3, kind: output, shape index: {}]  }
   0x1   :  { %s517_s14 = smov 0  }
   0x2 LB: > { %s25_s15 = sadd.s32 1, %s485_s13  ;;  %p414_p0 = scmp.ge.s32.totalorder %s489_s14, 1  ;;  %s489_s14 = sphi %s517_s14, %s13_s14   ;;  %s485_s13 = sphi %s515_s13, %s564_s13   ;;  %s481_s12 = sphi %s513_s12, %s563_s12  }
   0x3   : > { %p27_p1 = scmp.ge.s32.totalorder %s25_s15, 2  ;;  %p158_p2 = scmp.lt.s32.totalorder %s489_s14, 3 }
   0x5   : > { %s566_s15 = smov (%p27_p1, %s25_s15), 0  ;;  %p159_p3 = pnand %p414_p0, %p158_p2 }
   0x6   : > { %p191_p4 = scmp.lt.s32.totalorder (!%p159_p3), %s481_s12, 1  ;;  %vm256_vm0 = vcmask (!%p159_p3), 1044480   ;;  %v491_v0 = vmov (!%p159_p3), 0   ;;  %v217_v1 = vld [vmem:[%s561_s2] sm:$0xff] (!%p159_p3)  ;;  %vm257_vm1 = vcmask (!%p159_p3), 1045504   ;;  %v492_v2 = vmov (!%p159_p3), 65535  }
   0x7   : > { %162 = sbr.rel (%p159_p3) target bundleno = 246 (0xf6), region = 32  ;;  %298 = vmatprep.mubr.bf16.mxu0 (!%p159_p3), %v491_v0  ;;  %459 = vset.pattern.permute.xlu0 (!%p159_p3), %v491_v0  ;;  %v258_v3 = vsel (!%p159_p3), %vm256_vm0, 4294967295, %v492_v2  ;;  %v218_v4 = vld [vmem:[%s561_s2 + $0x8] sm:$0xff] (!%p159_p3)  ;;  %v466_v12 = vld [vmem:[%s560_s1] sm:$0xff] (!%p159_p3)   ;;  %vm252_vm2 = vcmask (!%p159_p3), 220160  }
   0x8   : > { %221 = vperm.xlu0 (!%p159_p3), %459, %v217_v1   ;;  %v259_v7 = vsel (!%p159_p3), %vm257_vm1, %v258_v3, 0 }
   0xc   : > { %226 = vperm.xlu0 (!%p159_p3), %459, %v218_v4  }
   0xe   : > { %s568_s12 = smov (!%p191_p4, %s481_s12), 1 }
   0xf   : > { %s429_s18 = sshll.u32 %s568_s12, 5  ;;  %s430_s26 = sshll.u32 %s568_s12, 4 }
  0x10   : > { %s198_s23 = scalar_lea.vmem %s559_s0, %s429_s18  ;;  %s208_s29 = scalar_lea.vmem %s562_s3, %s430_s26 }
  0x11   : > { %v460_v5 = vld [vmem:[%s198_s23 + $0x4] ss:$8 sps:$4 sm:$0xff]   ;;  %v462_v6 = vld [vmem:[%s198_s23] ss:$8 sps:$4 sm:$0xff]  }
  0x12   : > { %266 = vmatprep.subr.bf16.mxu0 %v460_v5  ;;  %v463_v8 = vld [vmem:[%s198_s23 + $0x14] ss:$8 sps:$4 sm:$0x3f]   ;;  %v465_v9 = vld [vmem:[%s198_s23 + $0x10] ss:$8 sps:$4 sm:$0x3f]  }
  0x13   : > { %267 = vmatpush1.bf16.msra.mxu0 %v462_v6  ;;  %v264_v10 = vand.u32 %v463_v8, %v259_v7  ;;  %v261_v11 = vand.u32 %v465_v9, %v259_v7 }
  0x15   : > { %268 = vmatprep.subr.bf16.mxu0 %v264_v10 }
  0x17   : > { %269 = vmatpush1.bf16.msra.mxu0 %v261_v11 }
  0x1a   : > { %424 = vmatmul.mubr.msk.bf16.vlgmr.msra.gmra.mrb[0].mxu0 %vm252_vm2, %v466_v12 }
  0x87   : > { %v222_v13 = vpop.permute.xlu0 %221 }
  0x8b   : > { %v227_v17 = vpop.permute.xlu0 %226 }
  0xed   : > { %v300_v14 = vpop.f32.mrb[0].mxu0 }
  0xee   : > { %v301_v15 = vadd.f32 %v300_v14, %v222_v13  ;;  %v302_v16 = vpop.f32.mrb[1].mxu0 }
  0xef   : > { %v303_v18 = vadd.f32 %v302_v16, %v222_v13  ;;  %v304_v19 = vpop.f32.mrb[2].mxu0 }
  0xf0   : > { %v305_v20 = vadd.f32 %v304_v19, %v227_v17  ;;  %v306_v21 = vpop.f32.mrb[3].mxu0 }
  0xf1   : > { %v431_v22 = vpack.c.bf16 %v303_v18, %v301_v15  ;;  %v307_v23 = vadd.f32 %v306_v21, %v227_v17 }
  0xf3   : > { %321 = vst [vmem:[%s208_s29] sm:$0xff] %v431_v22  ;;  %v432_v24 = vpack.c.bf16 %v307_v23, %v305_v20 }
  0xf5   : > { %322 = vst [vmem:[%s208_s29 + $0x8] sm:$0xff] %v432_v24 }
  0xf6 PF: > { %s13_s14 = sadd.s32 1, %s489_s14   ;;  %s563_s12 = smov %s485_s13 }
  0xf7   : > { %p10_p5 = scmp.ge.s32.totalorder %s13_s14, 4   ;;  %s564_s13 = smov %s566_s15 }
  0xf9   :  { %12 = sbr.rel (!%p10_p5) target bundleno = 2 (0x2), region = 62 }

// kernel: model_forward.19
= control target key start
LH: loop header
LB: loop body
LE: loop exit
PB: predicated region body
PF: predicated region fallthrough
CT: control target
= control target key end

     0   :  { %s842_s24 = smov 0   ;;  %s844_s25 = smov 0   ;;  %s901_s0 = inlined_call_operand.vmem [shape: bf16[2,16,256], index: 0, kind: input, shape index: {}]   ;;  %s902_s1 = inlined_call_operand.vmem [shape: bf16[12,16], index: 1, kind: input, shape index: {}]   ;;  %s903_s2 = inlined_call_operand.vmem [shape: f32[12,1], index: 2, kind: input, shape index: {}]   ;;  %s904_s3 = inlined_call_operand.vmem [shape: bf16[8,16], index: 3, kind: input, shape index: {}]   ;;  %s905_s4 = inlined_call_operand.vmem [shape: f32[8,1], index: 4, kind: input, shape index: {}]   ;;  %s906_s5 = inlined_call_operand.vmem [shape: bf16[2,8,256], index: 5, kind: output, shape index: {0}]   ;;  %s907_s6 = inlined_call_operand.vmem [shape: bf16[2,4,256], index: 6, kind: output, shape index: {1}]   ;;  %s908_s7 = inlined_call_operand.vmem [shape: bf16[2,8,256], index: 7, kind: output, shape index: {2}]  }
   0x1   :  { %s846_s26 = smov 0  }
   0x2 LB: > { %s30_s27 = sadd.s32 1, %s795_s25  ;;  %p720_p0 = scmp.ge.s32.totalorder %s799_s26, 1  ;;  %s799_s26 = sphi %s846_s26, %s18_s26   ;;  %s795_s25 = sphi %s844_s25, %s910_s25   ;;  %s791_s24 = sphi %s842_s24, %s909_s24  }
   0x3   : > { %p32_p1 = scmp.ge.s32.totalorder %s30_s27, 2  ;;  %p267_p2 = scmp.lt.s32.totalorder %s799_s26, 3 }
   0x5   : > { %s912_s27 = smov (%p32_p1, %s30_s27), 0  ;;  %p268_p3 = pnand %p720_p0, %p267_p2 }
   0x6   : > { %p326_p4 = scmp.lt.s32.totalorder (!%p268_p3), %s791_s24, 1  ;;  %v801_v0 = vmov (!%p268_p3), 0   ;;  %v468_v1 = vld [vmem:[%s905_s4] sm:$0xff] (!%p268_p3)  ;;  %v371_v2 = vld [vmem:[%s903_s2 + $0x8] sm:$0xf] (!%p268_p3)  ;;  %vm397_vm0 = vcmask (!%p268_p3), 130048  }
   0x7   : > { %271 = sbr.rel (%p268_p3) target bundleno = 242 (0xf2), region = 40  ;;  %433 = vmatprep.mubr.bf16.mxu0 (!%p268_p3), %v801_v0  ;;  %509 = vmatprep.mubr.bf16.mxu1 (!%p268_p3), %v801_v0  ;;  %v370_v3 = vld [vmem:[%s903_s2] sm:$0xff] (!%p268_p3) }
   0x8   : > { %771 = vset.pattern.permute.xlu0 (!%p268_p3), %v801_v0  ;;  %772 = vset.pattern.permute.xlu1 (!%p268_p3), %v801_v0  ;;  %v776_v6 = vld [vmem:[%s902_s1] sm:$0x3f] (!%p268_p3)  }
   0x9   : > { %471 = vperm.xlu0 (!%p268_p3), %771, %v468_v1   ;;  %379 = vperm.xlu1 (!%p268_p3), %772, %v371_v2   ;;  %v467_v7 = vld [vmem:[%s904_s3] sm:$0xf] (!%p268_p3) }
   0xd   : > { %374 = vperm.xlu0 (!%p268_p3), %771, %v370_v3  }
   0xe   : > { %s914_s24 = smov (!%p326_p4, %s791_s24), 1 }
   0xf   : > { %s740_s9 = sshll.u32 %s914_s24, 4  ;;  %s741_s19 = sshll.u32 %s914_s24, 3 }
  0x10   : > { %s333_s14 = scalar_lea.vmem %s901_s0, %s740_s9  ;;  %s742_s20 = sshll.u32 %s914_s24, 2 }
  0x11   : > { %v773_v4 = vld [vmem:[%s333_s14 + $0x4] ss:$8 sps:$4 sm:$0xff]   ;;  %v775_v5 = vld [vmem:[%s333_s14] ss:$8 sps:$4 sm:$0xff]   ;;  %s343_s23 = scalar_lea.vmem %s906_s5, %s741_s19  ;;  %s363_s30 = scalar_lea.vmem %s908_s7, %s741_s19 }
  0x12   : > { %401 = vmatprep.subr.bf16.mxu0 %v773_v4  ;;  %477 = vmatprep.subr.bf16.mxu1 %v773_v4  ;;  %s353_s10 = scalar_lea.vmem %s907_s6, %s742_s20 }
  0x13   : > { %402 = vmatpush1.bf16.msra.mxu0 %v775_v5  ;;  %478 = vmatpush1.bf16.msra.mxu1 %v775_v5 }
  0x16   : > { %732 = vmatmul.mubr.msk.bf16.vlgmr.msra.gmra.mrb[0].mxu0 %vm397_vm0, %v776_v6  ;;  %736 = vmatmul.mubr.msk.bf16.vlgmr.msra.gmra.mrb[0].mxu1 %vm397_vm0, %v467_v7 }
  0x88   : > { %v472_v8 = vpop.permute.xlu0 %471  ;;  %v380_v10 = vpop.permute.xlu1 %379 }
  0x8c   : > { %v375_v9 = vpop.permute.xlu0 %374 }
  0xe9   : > { %v435_v11 = vpop.f32.mrb[0].mxu0  ;;  %v511_v12 = vpop.f32.mrb[0].mxu1 }
  0xea   : > { %v436_v13 = vadd.f32 %v435_v11, %v375_v9  ;;  %v512_v14 = vadd.f32 %v511_v12, %v472_v8  ;;  %v437_v15 = vpop.f32.mrb[1].mxu0  ;;  %v513_v16 = vpop.f32.mrb[1].mxu1 }
  0xeb   : > { %v438_v17 = vadd.f32 %v437_v15, %v375_v9  ;;  %v514_v18 = vadd.f32 %v513_v16, %v472_v8  ;;  %v439_v19 = vpop.f32.mrb[2].mxu0  ;;  %v515_v20 = vpop.f32.mrb[2].mxu1 }
  0xec   : > { %v518_v21 = vmax.f32 %v512_v14, 0.0  ;;  %v440_v22 = vadd.f32 %v439_v19, %v380_v10  ;;  %v441_v23 = vpop.f32.mrb[3].mxu0  ;;  %v516_v24 = vpop.f32.mrb[3].mxu1 }
  0xed   : > { %v744_v25 = vpack.c.bf16 %v438_v17, %v436_v13  ;;  %v519_v26 = vmax.f32 %v514_v18, 0.0  ;;  %v442_v27 = vadd.f32 %v441_v23, %v380_v10 }
  0xef   : > { %452 = vst [vmem:[%s343_s23] sm:$0xff] %v744_v25  ;;  %v745_v28 = vpack.c.bf16 %v519_v26, %v518_v21  ;;  %v734_v29 = vpack.c.bf16 %v442_v27, %v440_v22 }
  0xf1   : > { %528 = vst [vmem:[%s363_s30] sm:$0xff] %v745_v28  ;;  %735 = vst.sshfl [vmem:[%s353_s10] sm:$0x33 pattern:$0x76325410] %v734_v29 }
  0xf2 PF: > { %s18_s26 = sadd.s32 1, %s799_s26   ;;  %s909_s24 = smov %s795_s25 }
  0xf3   : > { %p15_p5 = scmp.ge.s32.totalorder %s18_s26, 4   ;;  %s910_s25 = smov %s912_s27 }
  0xf5   :  { %17 = sbr.rel (!%p15_p5) target bundleno = 2 (0x2), region = 94 }

// kernel: model_forward.20
= control target key start
LH: loop header
LB: loop body
LE: loop exit
PB: predicated region body
PF: predicated region fallthrough
CT: control target
= control target key end

     0   :  { %s766_s18 = smov 0   ;;  %s768_s19 = smov 0   ;;  %s819_s0 = inlined_call_operand.vmem [shape: bf16[2,72,256], index: 0, kind: input, shape index: {}]   ;;  %s820_s1 = inlined_call_operand.vmem [shape: bf16[12,72], index: 1, kind: input, shape index: {}]   ;;  %s821_s2 = inlined_call_operand.vmem [shape: f32[12,1], index: 2, kind: input, shape index: {}]   ;;  %s822_s3 = inlined_call_operand.vmem [shape: bf16[2,8,256], index: 3, kind: input, shape index: {}]   ;;  %s823_s4 = inlined_call_operand.vmem [shape: bf16[2,8,256], index: 4, kind: output, shape index: {0}]   ;;  %s824_s5 = inlined_call_operand.vmem [shape: bf16[2,4,256], index: 5, kind: output, shape index: {1}]  }
   0x1   :  { %s770_s20 = smov 0  }
   0x2 LB: > { %s28_s21 = sadd.s32 1, %s729_s19  ;;  %p639_p0 = scmp.ge.s32.totalorder %s733_s20, 1  ;;  %s733_s20 = sphi %s770_s20, %s16_s20   ;;  %s729_s19 = sphi %s768_s19, %s826_s19   ;;  %s725_s18 = sphi %s766_s18, %s825_s18  }
   0x3   : > { %p30_p1 = scmp.ge.s32.totalorder %s28_s21, 2  ;;  %p230_p2 = scmp.lt.s32.totalorder %s733_s20, 3 }
   0x5   : > { %s828_s21 = smov (%p30_p1, %s28_s21), 0  ;;  %p231_p3 = pnand %p639_p0, %p230_p2 }
   0x6   : > { %p285_p4 = scmp.lt.s32.totalorder (!%p231_p3), %s725_s18, 1  ;;  %v735_v0 = vmov (!%p231_p3), 0   ;;  %v336_v1 = vld [vmem:[%s821_s2] sm:$0xff] (!%p231_p3)  ;;  %v337_v2 = vld [vmem:[%s821_s2 + $0x8] sm:$0xf] (!%p231_p3)  ;;  %vm402_vm0 = vcmask (!%p231_p3), 1043456  }
   0x7   : > { %234 = sbr.rel (%p231_p3) target bundleno = 259 (0x103), region = 36  ;;  %441 = vmatprep.mubr.bf16.mxu0 (!%p231_p3), %v735_v0  ;;  %695 = vset.pattern.permute.xlu0 (!%p231_p3), %v735_v0  ;;  %v710_v15 = vld [vmem:[%s820_s1] sm:$0x3f] (!%p231_p3)   ;;  %vm398_vm1 = vcmask (!%p231_p3), 588800  }
   0x8   : > { %340 = vperm.xlu0 (!%p231_p3), %695, %v336_v1  }
   0xc   : > { %345 = vperm.xlu0 (!%p231_p3), %695, %v337_v2  }
   0xe   : > { %s830_s18 = smov (!%p285_p4, %s725_s18), 1 }
   0xf   : > { %s669_s26 = smul.u32 72, %s830_s18  ;;  %s665_s7 = sshll.u32 %s830_s18, 3 }
  0x10   : > { %s302_s10 = scalar_lea.vmem %s822_s3, %s665_s7  ;;  %s667_s11 = sshll.u32 %s830_s18, 2 }
  0x11   : > { %s292_s29 = scalar_lea.vmem %s819_s0, %s669_s26  ;;  %v452_v17 = vld [vmem:[%s302_s10] sm:$0xff]  ;;  %s312_s14 = scalar_lea.vmem %s823_s4, %s665_s7 }
  0x12   : > { %v696_v3 = vld [vmem:[%s292_s29 + $0x4] ss:$8 sps:$4 sm:$0xff]   ;;  %v698_v4 = vld [vmem:[%s292_s29] ss:$8 sps:$4 sm:$0xff]   ;;  %v699_v5 = vld [vmem:[%s292_s29 + $0x14] ss:$8 sps:$4 sm:$0xff]   ;;  %v453_v18 = vunpack.c.l.bf16 %v452_v17  ;;  %v454_v20 = vunpack.c.h.bf16 %v452_v17  ;;  %s322_s17 = scalar_lea.vmem %s824_s5, %s667_s11 }
  0x13   : > { %409 = vmatprep.subr.bf16.mxu0 %v696_v3  ;;  %v701_v6 = vld [vmem:[%s292_s29 + $0x10] ss:$8 sps:$4 sm:$0xff]   ;;  %v702_v7 = vld [vmem:[%s292_s29 + $0x24] ss:$8 sps:$4 sm:$0xff]   ;;  %v704_v8 = vld [vmem:[%s292_s29 + $0x20] ss:$8 sps:$4 sm:$0xff]  }
  0x14   : > { %410 = vmatpush1.bf16.msra.mxu0 %v698_v4  ;;  %v705_v9 = vld [vmem:[%s292_s29 + $0x34] ss:$8 sps:$4 sm:$0xff]   ;;  %v335_v10 = vld [vmem:[%s292_s29 + $0x40] sm:$0xff]  ;;  %v707_v11 = vld [vmem:[%s292_s29 + $0x30] ss:$8 sps:$4 sm:$0xff]  }
  0x15   : > { %411 = vmatprep.subr.bf16.mxu0 %v699_v5  ;;  %v657_v12 = vcombine.high %v335_v10, %v335_v10  ;;  %v656_v13 = vcombine.low %v335_v10, %v335_v10 }
  0x17   : > { %v404_v14 = vsel %vm402_vm0, %v656_v13, 0 }
  0x18   : > { %412 = vmatpush1.bf16.msra.mxu0 %v701_v6 }
  0x19   : > { %413 = vmatprep.subr.bf16.mxu0 %v702_v7 }
  0x1c   : > { %414 = vmatpush1.bf16.msra.mxu0 %v704_v8 }
  0x1d   : > { %415 = vmatprep.subr.bf16.mxu0 %v705_v9 }
  0x20   : > { %416 = vmatpush1.bf16.msra.mxu0 %v707_v11 }
  0x21   : > { %658 = vmatprep.subr.msk.bf16.mxu0 %vm402_vm0, %v657_v12 }
  0x24   : > { %418 = vmatpush1.bf16.msra.mxu0 %v404_v14 }
  0x27   : > { %659 = vmatmul.mubr.msk.bf16.vlgmr.msra.gmra.mrb[0].mxu0 %vm398_vm1, %v710_v15 }
  0x87   : > { %v341_v16 = vpop.permute.xlu0 %340 }
  0x8b   : > { %v346_v23 = vpop.permute.xlu0 %345 }
  0xfa   : > { %v443_v19 = vpop.f32.mrb[0].mxu0 }
  0xfb   : > { %v444_v21 = vadd.f32 %v443_v19, %v341_v16  ;;  %v445_v22 = vpop.f32.mrb[1].mxu0 }
  0xfc   : > { %v446_v24 = vadd.f32 %v445_v22, %v341_v16  ;;  %v447_v25 = vpop.f32.mrb[2].mxu0 }
  0xfd   : > { %v455_v26 = vadd.f32 %v453_v18, %v444_v21  ;;  %v448_v27 = vadd.f32 %v447_v25, %v346_v23  ;;  %v449_v28 = vpop.f32.mrb[3].mxu0 }
  0xfe   : > { %v456_v29 = vadd.f32 %v454_v20, %v446_v24  ;;  %v450_v30 = vadd.f32 %v449_v28, %v346_v23 }
 0x100   : > { %v668_v31 = vpack.c.bf16 %v456_v29, %v455_v26  ;;  %v661_v32 = vpack.c.bf16 %v450_v30, %v448_v27 }
 0x102   : > { %465 = vst [vmem:[%s312_s14] sm:$0xff] %v668_v31  ;;  %662 = vst.sshfl [vmem:[%s322_s17] sm:$0x33 pattern:$0x76325410] %v661_v32 }
 0x103 PF: > { %s16_s20 = sadd.s32 1, %s733_s20   ;;  %s825_s18 = smov %s729_s19 }
 0x104   : > { %p13_p5 = scmp.ge.s32.totalorder %s16_s20, 4   ;;  %s826_s19 = smov %s828_s21 }
 0x106   :  { %15 = sbr.rel (!%p13_p5) target bundleno = 2 (0x2), region = 81 }

// kernel: model_forward.21
= control target key start
LH: loop header
LB: loop body
LE: loop exit
PB: predicated region body
PF: predicated region fallthrough
CT: control target
= control target key end

     0   :  { %s652_s18 = smov 0   ;;  %s654_s19 = smov 0   ;;  %s702_s0 = inlined_call_operand.vmem [shape: bf16[2,8,256], index: 0, kind: input, shape index: {}]   ;;  %s703_s1 = inlined_call_operand.vmem [shape: bf16[2,8,256], index: 1, kind: input, shape index: {}]   ;;  %s704_s2 = inlined_call_operand.vmem [shape: bf16[8,8], index: 2, kind: input, shape index: {}]   ;;  %s705_s3 = inlined_call_operand.vmem [shape: bf16[8,8], index: 3, kind: input, shape index: {}]   ;;  %s706_s4 = inlined_call_operand.vmem [shape: f32[8,1], index: 4, kind: input, shape index: {}]   ;;  %s707_s5 = inlined_call_operand.vmem [shape: bf16[2,8,256], index: 5, kind: output, shape index: {}]  }
   0x1   :  { %s656_s20 = smov 0  }
   0x2 LB: > { %s27_s21 = sadd.s32 1, %s615_s19  ;;  %p545_p0 = scmp.ge.s32.totalorder %s619_s20, 1  ;;  %s619_s20 = sphi %s656_s20, %s15_s20   ;;  %s615_s19 = sphi %s654_s19, %s709_s19   ;;  %s611_s18 = sphi %s652_s18, %s708_s18  }
   0x3   : > { %p29_p1 = scmp.ge.s32.totalorder %s27_s21, 2  ;;  %p225_p2 = scmp.lt.s32.totalorder %s619_s20, 3 }
   0x5   : > { %s711_s21 = smov (%p29_p1, %s27_s21), 0  ;;  %p226_p3 = pnand %p545_p0, %p225_p2 }
   0x6   : > { %p271_p4 = scmp.lt.s32.totalorder (!%p226_p3), %s611_s18, 1  ;;  %v621_v0 = vmov (!%p226_p3), 0   ;;  %v417_v1 = vld [vmem:[%s706_s4] sm:$0xff] (!%p226_p3)  ;;  %vm314_vm0 = vcmask (!%p226_p3), 1043456   ;;  %vm310_vm1 = vcmask (!%p226_p3), 64512  }
   0x7   : > { %229 = sbr.rel (%p226_p3) target bundleno = 247 (0xf7), region = 40  ;;  %353 = vmatprep.mubr.bf16.mxu0 (!%p226_p3), %v621_v0  ;;  %408 = vmatprep.mubr.bf16.mxu1 (!%p226_p3), %v621_v0  ;;  %v303_v10 = vld [vmem:[%s705_s3] sm:$0xf] (!%p226_p3) }
   0x8   : > { %592 = vset.pattern.permute.xlu0 (!%p226_p3), %v621_v0  ;;  %v301_v11 = vld [vmem:[%s704_s2] sm:$0xf] (!%p226_p3) }
   0x9   : > { %420 = vperm.xlu0 (!%p226_p3), %592, %v417_v1  }
   0xe   : > { %s713_s18 = smov (!%p271_p4, %s611_s18), 1 }
   0xf   : > { %s673_s24 = sshll.u32 %s713_s18, 3 }
  0x10   : > { %s288_s27 = scalar_lea.vmem %s703_s1, %s673_s24  ;;  %s278_s30 = scalar_lea.vmem %s702_s0, %s673_s24 }
  0x11   : > { %v304_v2 = vld [vmem:[%s288_s27] sm:$0xff]  ;;  %s298_s12 = scalar_lea.vmem %s707_s5, %s673_s24 }
  0x12   : > { %v302_v3 = vld [vmem:[%s278_s30] sm:$0xff]  ;;  %v553_v4 = vcombine.high %v304_v2, %v304_v2  ;;  %v552_v6 = vcombine.low %v304_v2, %v304_v2 }
  0x13   : > { %v557_v5 = vcombine.high %v302_v3, %v302_v3  ;;  %v556_v7 = vcombine.low %v302_v3, %v302_v3 }
  0x14   : > { %554 = vmatprep.subr.msk.bf16.mxu0 %vm314_vm0, %v553_v4  ;;  %v316_v8 = vsel %vm314_vm0, %v552_v6, 0 }
  0x15   : > { %558 = vmatprep.subr.msk.bf16.mxu1 %vm314_vm0, %v557_v5  ;;  %v371_v9 = vsel %vm314_vm0, %v556_v7, 0  ;;  %322 = vmatpush1.bf16.msra.mxu0 %v316_v8 }
  0x16   : > { %377 = vmatpush1.bf16.msra.mxu1 %v371_v9 }
  0x18   : > { %555 = vmatmul.mubr.msk.bf16.vlgmr.msra.gmra.mrb[0].mxu0 %vm310_vm1, %v303_v10 }
  0x19   : > { %559 = vmatmul.mubr.msk.bf16.vlgmr.msra.gmra.mrb[0].mxu1 %vm310_vm1, %v301_v11 }
  0x88   : > { %v421_v12 = vpop.permute.xlu0 %420 }
  0xeb   : > { %v355_v13 = vpop.f32.mrb[0].mxu0 }
  0xec   : > { %v410_v14 = vpop.f32.mrb[0].mxu1  ;;  %v357_v16 = vpop.f32.mrb[1].mxu0 }
  0xed   : > { %v411_v15 = vadd.f32 %v410_v14, %v355_v13  ;;  %v412_v17 = vpop.f32.mrb[1].mxu1  ;;  %v359_v19 = vpop.f32.mrb[2].mxu0 }
  0xee   : > { %v413_v18 = vadd.f32 %v412_v17, %v357_v16  ;;  %v414_v20 = vpop.f32.mrb[2].mxu1  ;;  %v360_v22 = vpop.f32.mrb[3].mxu0 }
  0xef   : > { %v423_v21 = vadd.f32 %v421_v12, %v411_v15  ;;  %v415_v23 = vpop.f32.mrb[3].mxu1 }
  0xf0   : > { %v424_v24 = vadd.f32 %v421_v12, %v413_v18 }
  0xf1   : > { %v425_v25 = vmax.f32 %v423_v21, 0.0 }
  0xf2   : > { %v426_v26 = vmax.f32 %v424_v24, 0.0 }
  0xf4   : > { %v566_v27 = vpack.c.bf16 %v426_v26, %v425_v25 }
  0xf6   : > { %435 = vst [vmem:[%s298_s12] sm:$0xff] %v566_v27 }
  0xf7 PF: > { %s15_s20 = sadd.s32 1, %s619_s20   ;;  %s708_s18 = smov %s615_s19 }
  0xf8   : > { %p12_p5 = scmp.ge.s32.totalorder %s15_s20, 4   ;;  %s709_s19 = smov %s711_s21 }
  0xfa   :  { %14 = sbr.rel (!%p12_p5) target bundleno = 2 (0x2), region = 73 }

// kernel: model_forward.23
= control target key start
LH: loop header
LB: loop body
LE: loop exit
PB: predicated region body
PF: predicated region fallthrough
CT: control target
= control target key end

     0   :  { %s659_s18 = smov 0   ;;  %s661_s19 = smov 0   ;;  %s712_s0 = inlined_call_operand.vmem [shape: bf16[2,8,256], index: 0, kind: input, shape index: {}]   ;;  %s713_s1 = inlined_call_operand.vmem [shape: bf16[2,12,256], index: 1, kind: input, shape index: {}]   ;;  %s714_s2 = inlined_call_operand.vmem [shape: bf16[8,8], index: 2, kind: input, shape index: {}]   ;;  %s715_s3 = inlined_call_operand.vmem [shape: bf16[8,12], index: 3, kind: input, shape index: {}]   ;;  %s716_s4 = inlined_call_operand.vmem [shape: f32[8,1], index: 4, kind: input, shape index: {}]   ;;  %s717_s5 = inlined_call_operand.vmem [shape: bf16[2,8,256], index: 5, kind: output, shape index: {}]  }
   0x1   :  { %s663_s20 = smov 0  }
   0x2 LB: > { %s27_s21 = sadd.s32 1, %s622_s19  ;;  %p551_p0 = scmp.ge.s32.totalorder %s626_s20, 1  ;;  %s626_s20 = sphi %s663_s20, %s15_s20   ;;  %s622_s19 = sphi %s661_s19, %s719_s19   ;;  %s618_s18 = sphi %s659_s18, %s718_s18  }
   0x3   : > { %p29_p1 = scmp.ge.s32.totalorder %s27_s21, 2  ;;  %p225_p2 = scmp.lt.s32.totalorder %s626_s20, 3 }
   0x5   : > { %s721_s21 = smov (%p29_p1, %s27_s21), 0  ;;  %p226_p3 = pnand %p551_p0, %p225_p2 }
   0x6   : > { %p271_p4 = scmp.lt.s32.totalorder (!%p226_p3), %s618_s18, 1  ;;  %v628_v0 = vmov (!%p226_p3), 0   ;;  %v423_v1 = vld [vmem:[%s716_s4] sm:$0xff] (!%p226_p3)  ;;  %vm318_vm0 = vcmask (!%p226_p3), 1045504   ;;  %vm375_vm1 = vcmask (!%p226_p3), 1043456   ;;  %vm314_vm2 = vcmask (!%p226_p3), 97280  }
   0x7   : > { %229 = sbr.rel (%p226_p3) target bundleno = 247 (0xf7), region = 40  ;;  %357 = vmatprep.mubr.bf16.mxu0 (!%p226_p3), %v628_v0  ;;  %414 = vmatprep.mubr.bf16.mxu1 (!%p226_p3), %v628_v0  ;;  %v303_v9 = vld [vmem:[%s715_s3] sm:$0xf] (!%p226_p3)  ;;  %vm371_vm3 = vcmask (!%p226_p3), 64512  }
   0x8   : > { %598 = vset.pattern.permute.xlu0 (!%p226_p3), %v628_v0  ;;  %v301_v10 = vld [vmem:[%s714_s2] sm:$0xf] (!%p226_p3) }
   0x9   : > { %426 = vperm.xlu0 (!%p226_p3), %598, %v423_v1  }
   0xe   : > { %s723_s18 = smov (!%p271_p4, %s618_s18), 1 }
   0xf   : > { %s570_s24 = sshll.u32 %s723_s18, 4  ;;  %s569_s25 = sshll.u32 %s723_s18, 3 }
  0x10   : > { %s288_s28 = scalar_lea.vmem %s713_s1, %s570_s24  ;;  %s278_s6 = scalar_lea.vmem %s712_s0, %s569_s25 }
  0x11   : > { %v599_v2 = vld [vmem:[%s288_s28 + $0x4] ss:$8 sps:$4 sm:$0x3f]   ;;  %v602_v4 = vld [vmem:[%s288_s28] ss:$8 sps:$4 sm:$0x3f]   ;;  %s298_s13 = scalar_lea.vmem %s717_s5, %s569_s25 }
  0x12   : > { %v302_v3 = vld [vmem:[%s278_s6] sm:$0xff]  ;;  %560 = vmatprep.subr.msk.bf16.mxu0 %vm318_vm0, %v599_v2  ;;  %v320_v7 = vsel %vm318_vm0, %v602_v4, 0 }
  0x13   : > { %v563_v5 = vcombine.high %v302_v3, %v302_v3  ;;  %v562_v6 = vcombine.low %v302_v3, %v302_v3  ;;  %326 = vmatpush1.bf16.msra.mxu0 %v320_v7 }
  0x15   : > { %564 = vmatprep.subr.msk.bf16.mxu1 %vm375_vm1, %v563_v5  ;;  %v377_v8 = vsel %vm375_vm1, %v562_v6, 0 }
  0x16   : > { %383 = vmatpush1.bf16.msra.mxu1 %v377_v8  ;;  %561 = vmatmul.mubr.msk.bf16.vlgmr.msra.gmra.mrb[0].mxu0 %vm314_vm2, %v303_v9 }
  0x19   : > { %565 = vmatmul.mubr.msk.bf16.vlgmr.msra.gmra.mrb[0].mxu1 %vm371_vm3, %v301_v10 }
  0x88   : > { %v427_v12 = vpop.permute.xlu0 %426 }
  0xe9   : > { %v359_v11 = vpop.f32.mrb[0].mxu0 }
  0xea   : > { %v361_v14 = vpop.f32.mrb[1].mxu0 }
  0xeb   : > { %v363_v17 = vpop.f32.mrb[2].mxu0 }
  0xec   : > { %v416_v13 = vpop.f32.mrb[0].mxu1  ;;  %v364_v20 = vpop.f32.mrb[3].mxu0 }
  0xed   : > { %v417_v15 = vadd.f32 %v416_v13, %v359_v11  ;;  %v418_v16 = vpop.f32.mrb[1].mxu1 }
  0xee   : > { %v419_v18 = vadd.f32 %v418_v16, %v361_v14  ;;  %v420_v19 = vpop.f32.mrb[2].mxu1 }
  0xef   : > { %v429_v21 = vadd.f32 %v427_v12, %v417_v15  ;;  %v421_v22 = vpop.f32.mrb[3].mxu1 }
  0xf0   : > { %v430_v23 = vadd.f32 %v427_v12, %v419_v18 }
  0xf1   : > { %v431_v24 = vmax.f32 %v429_v21, 0.0 }
  0xf2   : > { %v432_v25 = vmax.f32 %v430_v23, 0.0 }
  0xf4   : > { %v572_v26 = vpack.c.bf16 %v432_v25, %v431_v24 }
  0xf6   : > { %441 = vst [vmem:[%s298_s13] sm:$0xff] %v572_v26 }
  0xf7 PF: > { %s15_s20 = sadd.s32 1, %s626_s20   ;;  %s718_s18 = smov %s622_s19 }
  0xf8   : > { %p12_p5 = scmp.ge.s32.totalorder %s15_s20, 4   ;;  %s719_s19 = smov %s721_s21 }
  0xfa   :  { %14 = sbr.rel (!%p12_p5) target bundleno = 2 (0x2), region = 73 }

// kernel: model_forward.25
= control target key start
LH: loop header
LB: loop body
LE: loop exit
PB: predicated region body
PF: predicated region fallthrough
CT: control target
= control target key end

     0   :  { %s1080_s15 = smov 0   ;;  %s1082_s16 = smov 0   ;;  %s1147_s0 = inlined_call_operand.<no memory space> [shape: f32[1,1], index: 0, kind: input, shape index: {}]   ;;  %s1148_s1 = inlined_call_operand.vmem [shape: bf16[2,8,256], index: 1, kind: input, shape index: {}]   ;;  %s1149_s2 = inlined_call_operand.vmem [shape: bf16[2,16,256], index: 2, kind: input, shape index: {}]   ;;  %s1150_s3 = inlined_call_operand.vmem [shape: f32[2,8,1], index: 3, kind: input, shape index: {}]   ;;  %s1151_s4 = inlined_call_operand.vmem [shape: f32[2,16,1], index: 4, kind: input, shape index: {}]   ;;  %s1152_s5 = inlined_call_operand.vmem [shape: bf16[16,8], index: 5, kind: input, shape index: {}]   ;;  %s1153_s6 = inlined_call_operand.vmem [shape: bf16[16,16], index: 6, kind: input, shape index: {}]   ;;  %s1154_s7 = inlined_call_operand.vmem [shape: f32[16,1], index: 7, kind: input, shape index: {}]   ;;  %s1155_s8 = inlined_call_operand.vmem [shape: bf16[2,16,256], index: 8, kind: input, shape index: {}, may-alias: {8,9}]   ;;  %s1156_s9 = inlined_call_operand.vmem [shape: bf16[2,16,256], index: 9, kind: input, shape index: {}, may-alias: {8,9}]   ;;  %s1157_s10 = inlined_call_operand.vmem [shape: bf16[2,16,256], index: 10, kind: output, shape index: {}]  }
   0x1   :  { %v15_v0 = vstv %s1147_s0  ;;  %s1084_s17 = smov 0  }
   0x2   :  { %16 = vst [vmem:[#allocation2] sm:$0x1] %v15_v0 }
   0x3 LB: > { %s34_s0 = sadd.s32 1, %s1015_s16  ;;  %p932_p0 = scmp.ge.s32.totalorder %s1019_s17, 1  ;;  %s1019_s17 = sphi %s1084_s17, %s22_s17   ;;  %s1015_s16 = sphi %s1082_s16, %s1159_s16   ;;  %s1011_s15 = sphi %s1080_s15, %s1158_s15  }
   0x4   : > { %p36_p1 = scmp.ge.s32.totalorder %s34_s0, 2  ;;  %p405_p2 = scmp.lt.s32.totalorder %s1019_s17, 3 }
   0x6   : > { %s1161_s0 = smov (%p36_p1, %s34_s0), 0  ;;  %p406_p3 = pnand %p932_p0, %p405_p2 }
   0x7   : > { %p488_p4 = scmp.lt.s32.totalorder (!%p406_p3), %s1011_s15, 1  ;;  %v1021_v1 = vmov (!%p406_p3), 0   ;;  %v699_v4 = vld [vmem:[%s1154_s7] sm:$0xff] (!%p406_p3)  ;;  %v700_v7 = vld [vmem:[%s1154_s7 + $0x8] sm:$0xff] (!%p406_p3)  ;;  %vm649_vm0 = vcmask (!%p406_p3), 1043456   ;;  %vm645_vm1 = vcmask (!%p406_p3), 64512  }
   0x8   : > { %409 = sbr.rel (%p406_p3) target bundleno = 385 (0x181), region = 60  ;;  %994 = vset.pattern.permute.xlu1 (!%p406_p3), %v1021_v1  ;;  %993 = vset.pattern.permute.xlu0 (!%p406_p3), %v1021_v1  ;;  %v995_v29 = vld [vmem:[%s1152_s5] sm:$0xff] (!%p406_p3)   ;;  %vm593_vm2 = vcmask (!%p406_p3), 130048  }
   0x9   : > { %688 = vmatprep.mubr.bf16.mxu0 (!%p406_p3), %v1021_v1  ;;  %629 = vmatprep.mubr.bf16.mxu1 (!%p406_p3), %v1021_v1  ;;  %v951_v6 = vld [vmem:[#allocation2] ss:$0 sm:$0xff] (!%p406_p3) }
   0xa   : > { %v996_v32 = vld [vmem:[%s1153_s6] sm:$0xff] (!%p406_p3)  }
   0xf   : > { %s1163_s15 = smov (!%p488_p4, %s1011_s15), 1 }
  0x10   : > { %s1098_s18 = sshll.u32 %s1163_s15, 4  ;;  %s956_s19 = sshll.u32 %s1163_s15, 3 }
  0x11   : > { %s515_s22 = scalar_lea.vmem %s1151_s4, %s1098_s18  ;;  %s510_s25 = scalar_lea.vmem %s1150_s3, %s956_s19 }
  0x12   : > { %v567_v2 = vld [vmem:[%s515_s22 + $0x8] sm:$0xff]  ;;  %v550_v3 = vld [vmem:[%s510_s25] sm:$0xff]  ;;  %s495_s12 = scalar_lea.vmem %s1148_s1, %s956_s19  ;;  %s505_s15 = scalar_lea.vmem %s1149_s2, %s1098_s18 }
  0x13   : > { %575 = vperm.xlu1 %994, %v567_v2   ;;  %553 = vperm.xlu0 %993, %v550_v3   ;;  %v566_v5 = vld [vmem:[%s515_s22] sm:$0xff]  ;;  %v561_v9 = vld [vmem:[%s505_s15 + $0x8] sm:$0xff]  ;;  %s534_s25 = scalar_lea.vmem %s1156_s9, %s1098_s18  ;;  %s524_s28 = scalar_lea.vmem %s1155_s8, %s1098_s18 }
  0x14   : > { %v547_v8 = vld [vmem:[%s495_s12] sm:$0xff]  ;;  %v564_v13 = vunpack.c.l.bf16 %v561_v9  ;;  %v565_v14 = vunpack.c.h.bf16 %v561_v9  ;;  %v727_v39 = vld [vmem:[%s534_s25 + $0x8] sm:$0xff]  ;;  %s544_s11 = scalar_lea.vmem %s1157_s10, %s1098_s18 }
  0x15   : > { %v548_v10 = vunpack.c.l.bf16 %v547_v8  ;;  %v549_v11 = vunpack.c.h.bf16 %v547_v8  ;;  %v560_v12 = vld [vmem:[%s505_s15] sm:$0xff]  ;;  %v716_v42 = vld [vmem:[%s524_s28 + $0x8] sm:$0xff]  ;;  %v730_v52 = vunpack.c.l.bf16 %v727_v39  ;;  %v731_v57 = vunpack.c.h.bf16 %v727_v39 }
  0x16   : > { %v562_v18 = vunpack.c.l.bf16 %v560_v12  ;;  %v563_v19 = vunpack.c.h.bf16 %v560_v12  ;;  %v726_v35 = vld [vmem:[%s534_s25] sm:$0xff]  ;;  %v719_v55 = vunpack.c.l.bf16 %v716_v42  ;;  %v720_v61 = vunpack.c.h.bf16 %v716_v42 }
  0x17   : > { %703 = vperm.xlu1 %994, %v699_v4   ;;  %570 = vperm.xlu0 %993, %v566_v5   ;;  %v715_v37 = vld [vmem:[%s524_s28] sm:$0xff]  ;;  %v728_v43 = vunpack.c.l.bf16 %v726_v35  ;;  %v729_v47 = vunpack.c.h.bf16 %v726_v35 }
  0x18   : > { %v717_v45 = vunpack.c.l.bf16 %v715_v37  ;;  %v718_v50 = vunpack.c.h.bf16 %v715_v37 }
  0x1b   : > { %738 = vperm.xlu1 %994, %v951_v6   ;;  %708 = vperm.xlu0 %993, %v700_v7  }
  0x92   : > { %v554_v15 = vpop.permute.xlu0 %553  ;;  %v576_v20 = vpop.permute.xlu1 %575 }
  0x93   : > { %v556_v16 = vmul.f32 %v554_v15, %v548_v10  ;;  %v557_v17 = vmul.f32 %v554_v15, %v549_v11  ;;  %v580_v21 = vmul.f32 %v576_v20, %v564_v13  ;;  %v581_v22 = vmul.f32 %v576_v20, %v565_v14 }
  0x95   : > { %v558_v23 = vpack.c.bf16 %v556_v16, %v556_v16  ;;  %v559_v24 = vpack.c.bf16 %v557_v17, %v557_v17 }
  0x96   : > { %v571_v25 = vpop.permute.xlu0 %570  ;;  %v704_v33 = vpop.permute.xlu1 %703 }
  0x97   : > { %v578_v26 = vmul.f32 %v571_v25, %v562_v18  ;;  %v579_v27 = vmul.f32 %v571_v25, %v563_v19  ;;  %949 = vmatprep.subr.msk.bf16.mxu0 %vm649_vm0, %v559_v24  ;;  %v651_v28 = vsel %vm649_vm0, %v558_v23, 0 }
  0x98   : > { %657 = vmatpush1.bf16.msra.mxu0 %v651_v28 }
  0x99   : > { %v583_v30 = vpack.c.bf16 %v581_v22, %v579_v27  ;;  %v582_v31 = vpack.c.bf16 %v580_v21, %v578_v26 }
  0x9a   : > { %v739_v48 = vpop.permute.xlu1 %738  ;;  %v709_v58 = vpop.permute.xlu0 %708 }
  0x9b   : > { %597 = vmatprep.subr.bf16.mxu1 %v583_v30  ;;  %950 = vmatmul.mubr.msk.bf16.vlgmr.msra.gmra.mrb[0].mxu0 %vm645_vm1, %v995_v29  ;;  %v741_v62 = vmul.f32 %v739_v48, %v728_v43  ;;  %v742_v1 = vmul.f32 %v739_v48, %v729_v47  ;;  %v743_v4 = vmul.f32 %v739_v48, %v730_v52 }
  0x9c   : > { %598 = vmatpush1.bf16.msra.mxu1 %v582_v31  ;;  %v744_v7 = vmul.f32 %v739_v48, %v731_v57 }
  0x9f   : > { %947 = vmatmul.mubr.msk.bf16.vlgmr.msra.gmra.mrb[0].mxu1 %vm593_vm2, %v996_v32 }
 0x16e   : > { %v690_v34 = vpop.f32.mrb[0].mxu0 }
 0x16f   : > { %v692_v36 = vpop.f32.mrb[1].mxu0 }
 0x170   : > { %v694_v38 = vpop.f32.mrb[2].mxu0 }
 0x171   : > { %v696_v41 = vpop.f32.mrb[3].mxu0 }
 0x172   : > { %v631_v40 = vpop.f32.mrb[0].mxu1 }
 0x173   : > { %v691_v44 = vadd.f32 %v690_v34, %v631_v40  ;;  %v633_v46 = vpop.f32.mrb[1].mxu1 }
 0x174   : > { %v693_v49 = vadd.f32 %v692_v36, %v633_v46  ;;  %v635_v51 = vpop.f32.mrb[2].mxu1 }
 0x175   : > { %v711_v53 = vadd.f32 %v704_v33, %v691_v44  ;;  %v695_v54 = vadd.f32 %v694_v38, %v635_v51  ;;  %v637_v56 = vpop.f32.mrb[3].mxu1 }
 0x176   : > { %v712_v59 = vadd.f32 %v704_v33, %v693_v49  ;;  %v697_v60 = vadd.f32 %v696_v41, %v637_v56 }
 0x177   : > { %v721_v63 = vadd.f32 %v717_v45, %v711_v53  ;;  %v713_v0 = vadd.f32 %v709_v58, %v695_v54 }
 0x178   : > { %v722_v2 = vadd.f32 %v718_v50, %v712_v59  ;;  %v714_v3 = vadd.f32 %v709_v58, %v697_v60 }
 0x179   : > { %v745_v5 = vadd.f32 %v741_v62, %v721_v63  ;;  %v723_v6 = vadd.f32 %v719_v55, %v713_v0 }
 0x17a   : > { %v746_v8 = vadd.f32 %v742_v1, %v722_v2  ;;  %v724_v9 = vadd.f32 %v720_v61, %v714_v3 }
 0x17b   : > { %v747_v10 = vadd.f32 %v743_v4, %v723_v6 }
 0x17c   : > { %v962_v11 = vpack.c.bf16 %v746_v8, %v745_v5  ;;  %v748_v12 = vadd.f32 %v744_v7, %v724_v9 }
 0x17e   : > { %761 = vst [vmem:[%s544_s11] sm:$0xff] %v962_v11  ;;  %v963_v13 = vpack.c.bf16 %v748_v12, %v747_v10 }
 0x180   : > { %762 = vst [vmem:[%s544_s11 + $0x8] sm:$0xff] %v963_v13 }
 0x181 PF: > { %s22_s17 = sadd.s32 1, %s1019_s17   ;;  %s1158_s15 = smov %s1015_s16 }
 0x182   : > { %p19_p5 = scmp.ge.s32.totalorder %s22_s17, 4   ;;  %s1159_s16 = smov %s1161_s0 }
 0x184   :  { %21 = sbr.rel (!%p19_p5) target bundleno = 3 (0x3), region = 105 }

// kernel: model_forward.33
= control target key start
LH: loop header
LB: loop body
LE: loop exit
PB: predicated region body
PF: predicated region fallthrough
CT: control target
= control target key end

     0   :  { %s727_s15 = smov 0   ;;  %s729_s16 = smov 0   ;;  %s799_s0 = inlined_call_operand.vmem [shape: bf16[2,144,256], index: 0, kind: input, shape index: {}]   ;;  %s800_s1 = inlined_call_operand.vmem [shape: bf16[16,144], index: 1, kind: input, shape index: {}]   ;;  %s801_s2 = inlined_call_operand.vmem [shape: f32[16,1], index: 2, kind: input, shape index: {}]   ;;  %s802_s3 = inlined_call_operand.vmem [shape: bf16[2,16,256], index: 3, kind: input, shape index: {}]   ;;  %s803_s4 = inlined_call_operand.vmem [shape: bf16[2,16,256], index: 4, kind: output, shape index: {}]  }
   0x1   :  { %s731_s17 = smov 0  }
   0x2 LB: > { %s26_s18 = sadd.s32 1, %s695_s16  ;;  %p585_p0 = scmp.ge.s32.totalorder %s699_s17, 1  ;;  %s699_s17 = sphi %s731_s17, %s14_s17   ;;  %s695_s16 = sphi %s729_s16, %s805_s16   ;;  %s691_s15 = sphi %s727_s15, %s804_s15  }
   0x3   : > { %p28_p1 = scmp.ge.s32.totalorder %s26_s18, 2  ;;  %p200_p2 = scmp.lt.s32.totalorder %s699_s17, 3 }
   0x5   : > { %s807_s18 = smov (%p28_p1, %s26_s18), 0  ;;  %p201_p3 = pnand %p585_p0, %p200_p2 }
   0x6   : > { %p244_p4 = scmp.lt.s32.totalorder (!%p201_p3), %s691_s15, 1  ;;  %vm405_vm0 = vcmask (!%p201_p3), 130048   ;;  %v676_v0 = vld [vmem:[%s800_s1 + $0x4] ss:$8 sps:$4 sm:$0xff] (!%p201_p3)   ;;  %v701_v2 = vmov (!%p201_p3), 0  }
   0x7   : > { %204 = sbr.rel (%p201_p3) target bundleno = 277 (0x115), region = 36  ;;  %v294_v1 = vld [vmem:[%s801_s2] sm:$0xff] (!%p201_p3)  ;;  %646 = vset.pattern.permute.xlu0 (!%p201_p3), %v701_v2  ;;  %611 = vmatprep.mubr.msk.bf16.mxu0 (!%p201_p3), %vm405_vm0, %v676_v0  ;;  %v295_v3 = vld [vmem:[%s801_s2 + $0x8] sm:$0xff] (!%p201_p3) }
   0x8   : > { %298 = vperm.xlu0 (!%p201_p3), %646, %v294_v1   ;;  %v674_v22 = vld [vmem:[%s800_s1] ss:$8 sps:$4 sm:$0xff] (!%p201_p3)  }
   0xc   : > { %303 = vperm.xlu0 (!%p201_p3), %646, %v295_v3  }
   0xe   : > { %s809_s15 = smov (!%p244_p4, %s691_s15), 1 }
   0xf   : > { %s620_s23 = smul.u32 144, %s809_s15  ;;  %s616_s5 = sshll.u32 %s809_s15, 4 }
  0x10   : > { %s261_s8 = scalar_lea.vmem %s802_s3, %s616_s5  ;;  %s271_s11 = scalar_lea.vmem %s803_s4, %s616_s5 }
  0x11   : > { %s760_s28 = scalar_lea.vmem %s799_s0, %s620_s23  ;;  %v452_v24 = vld [vmem:[%s261_s8] sm:$0xff]  ;;  %v453_v25 = vld [vmem:[%s261_s8 + $0x8] sm:$0xff] }
  0x12   : > { %v647_v4 = vld [vmem:[%s760_s28 + $0x4] ss:$8 sps:$4 sm:$0xff]   ;;  %v649_v5 = vld [vmem:[%s760_s28] ss:$8 sps:$4 sm:$0xff]   ;;  %v650_v6 = vld [vmem:[%s760_s28 + $0x14] ss:$8 sps:$4 sm:$0xff]   ;;  %v454_v26 = vunpack.c.l.bf16 %v452_v24  ;;  %v455_v28 = vunpack.c.h.bf16 %v452_v24  ;;  %v456_v31 = vunpack.c.l.bf16 %v453_v25  ;;  %v457_v35 = vunpack.c.h.bf16 %v453_v25 }
  0x13   : > { %409 = vmatprep.subr.bf16.mxu0 %v647_v4  ;;  %v652_v7 = vld [vmem:[%s760_s28 + $0x10] ss:$8 sps:$4 sm:$0xff]   ;;  %v653_v8 = vld [vmem:[%s760_s28 + $0x24] ss:$8 sps:$4 sm:$0xff]   ;;  %v655_v9 = vld [vmem:[%s760_s28 + $0x20] ss:$8 sps:$4 sm:$0xff]  }
  0x14   : > { %410 = vmatpush1.bf16.msra.mxu0 %v649_v5  ;;  %v656_v10 = vld [vmem:[%s760_s28 + $0x34] ss:$8 sps:$4 sm:$0xff]   ;;  %v658_v11 = vld [vmem:[%s760_s28 + $0x30] ss:$8 sps:$4 sm:$0xff]   ;;  %v659_v12 = vld [vmem:[%s760_s28 + $0x44] ss:$8 sps:$4 sm:$0xff]  }
  0x15   : > { %411 = vmatprep.subr.bf16.mxu0 %v650_v6  ;;  %v661_v13 = vld [vmem:[%s760_s28 + $0x40] ss:$8 sps:$4 sm:$0xff]   ;;  %v662_v14 = vld [vmem:[%s760_s28 + $0x54] ss:$8 sps:$4 sm:$0xff]   ;;  %v664_v15 = vld [vmem:[%s760_s28 + $0x50] ss:$8 sps:$4 sm:$0xff]  }
  0x16   : > { %v665_v16 = vld [vmem:[%s760_s28 + $0x64] ss:$8 sps:$4 sm:$0xff]   ;;  %v667_v17 = vld [vmem:[%s760_s28 + $0x60] ss:$8 sps:$4 sm:$0xff]   ;;  %v668_v18 = vld [vmem:[%s760_s28 + $0x74] ss:$8 sps:$4 sm:$0xff]  }
  0x17   : > { %v670_v19 = vld [vmem:[%s760_s28 + $0x70] ss:$8 sps:$4 sm:$0xff]   ;;  %v671_v20 = vld [vmem:[%s760_s28 + $0x84] ss:$8 sps:$4 sm:$0xff]   ;;  %v673_v21 = vld [vmem:[%s760_s28 + $0x80] ss:$8 sps:$4 sm:$0xff]  }
  0x18   : > { %412 = vmatpush1.bf16.msra.mxu0 %v652_v7 }
  0x19   : > { %413 = vmatprep.subr.bf16.mxu0 %v653_v8 }
  0x1c   : > { %414 = vmatpush1.bf16.msra.mxu0 %v655_v9 }
  0x1d   : > { %415 = vmatprep.subr.bf16.mxu0 %v656_v10 }
  0x20   : > { %416 = vmatpush1.bf16.msra.mxu0 %v658_v11 }
  0x21   : > { %417 = vmatprep.subr.bf16.mxu0 %v659_v12 }
  0x24   : > { %418 = vmatpush1.bf16.msra.mxu0 %v661_v13 }
  0x25   : > { %419 = vmatprep.subr.bf16.mxu0 %v662_v14 }
  0x28   : > { %420 = vmatpush1.bf16.msra.mxu0 %v664_v15 }
  0x29   : > { %421 = vmatprep.subr.bf16.mxu0 %v665_v16 }
  0x2c   : > { %422 = vmatpush1.bf16.msra.mxu0 %v667_v17 }
  0x2d   : > { %423 = vmatprep.subr.bf16.mxu0 %v668_v18 }
  0x30   : > { %424 = vmatpush1.bf16.msra.mxu0 %v670_v19 }
  0x31   : > { %425 = vmatprep.subr.bf16.mxu0 %v671_v20 }
  0x34   : > { %426 = vmatpush1.bf16.msra.mxu0 %v673_v21 }
  0x37   : > { %442 = vmatmul.mubr.bf16.vlgmr.msra.gmra.mrb[0].mxu0 %v674_v22 }
  0x87   : > { %v299_v23 = vpop.permute.xlu0 %298 }
  0x8b   : > { %v304_v32 = vpop.permute.xlu0 %303 }
 0x10a   : > { %v443_v27 = vpop.f32.mrb[0].mxu0 }
 0x10b   : > { %v444_v29 = vadd.f32 %v443_v27, %v299_v23  ;;  %v445_v30 = vpop.f32.mrb[1].mxu0 }
 0x10c   : > { %v446_v33 = vadd.f32 %v445_v30, %v299_v23  ;;  %v447_v34 = vpop.f32.mrb[2].mxu0 }
 0x10d   : > { %v458_v36 = vadd.f32 %v454_v26, %v444_v29  ;;  %v448_v37 = vadd.f32 %v447_v34, %v304_v32  ;;  %v449_v38 = vpop.f32.mrb[3].mxu0 }
 0x10e   : > { %v459_v39 = vadd.f32 %v455_v28, %v446_v33  ;;  %v450_v40 = vadd.f32 %v449_v38, %v304_v32 }
 0x10f   : > { %v460_v41 = vadd.f32 %v456_v31, %v448_v37 }
 0x110   : > { %v618_v42 = vpack.c.bf16 %v459_v39, %v458_v36  ;;  %v461_v43 = vadd.f32 %v457_v35, %v450_v40 }
 0x112   : > { %474 = vst [vmem:[%s271_s11] sm:$0xff] %v618_v42  ;;  %v619_v44 = vpack.c.bf16 %v461_v43, %v460_v41 }
 0x114   : > { %475 = vst [vmem:[%s271_s11 + $0x8] sm:$0xff] %v619_v44 }
 0x115 PF: > { %s14_s17 = sadd.s32 1, %s699_s17   ;;  %s804_s15 = smov %s695_s16 }
 0x116   : > { %p11_p5 = scmp.ge.s32.totalorder %s14_s17, 4   ;;  %s805_s16 = smov %s807_s18 }
 0x118   :  { %13 = sbr.rel (!%p11_p5) target bundleno = 2 (0x2), region = 69 }

// kernel: model_forward.34
= control target key start
LH: loop header
LB: loop body
LE: loop exit
PB: predicated region body
PF: predicated region fallthrough
CT: control target
= control target key end

     0   :  { %s827_s12 = smov 0   ;;  %s829_s13 = smov 0   ;;  %s946_s0 = inlined_call_operand.vmem [shape: bf16[2,144,256], index: 0, kind: input, shape index: {}]   ;;  %s947_s1 = inlined_call_operand.vmem [shape: bf16[64,144], index: 1, kind: input, shape index: {}]   ;;  %s948_s2 = inlined_call_operand.vmem [shape: f32[64,1], index: 2, kind: input, shape index: {}]   ;;  %s949_s3 = inlined_call_operand.vmem [shape: bf16[2,64,256], index: 3, kind: output, shape index: {}]  }
   0x1   :  { %s831_s14 = smov 0  }
   0x2 LB: > { %s25_s15 = sadd.s32 1, %s800_s13  ;;  %p644_p0 = scmp.ge.s32.totalorder %s804_s14, 1  ;;  %s804_s14 = sphi %s831_s14, %s13_s14   ;;  %s800_s13 = sphi %s829_s13, %s951_s13   ;;  %s796_s12 = sphi %s827_s12, %s950_s12  }
   0x3   : > { %p27_p1 = scmp.ge.s32.totalorder %s25_s15, 2  ;;  %p158_p2 = scmp.lt.s32.totalorder %s804_s14, 3 }
   0x5   : > { %s953_s15 = smov (%p27_p1, %s25_s15), 0  ;;  %p159_p3 = pnand %p644_p0, %p158_p2 }
   0x6   : > { %p191_p4 = scmp.lt.s32.totalorder (!%p159_p3), %s796_s12, 1  ;;  %vm411_vm0 = vcmask (!%p159_p3), 130048   ;;  %v772_v0 = vld [vmem:[%s947_s1 + $0x4] ss:$8 sps:$4 sm:$0xff] (!%p159_p3)   ;;  %v806_v2 = vmov (!%p159_p3), 0   ;;  %v239_v3 = vld [vmem:[%s948_s2 + $0x10] sm:$0xff] (!%p159_p3) }
   0x7   : > { %162 = sbr.rel (%p159_p3) target bundleno = 283 (0x11b), region = 32  ;;  %v775_v1 = vld [vmem:[%s947_s1 + $0x24] ss:$8 sps:$4 sm:$0xff] (!%p159_p3)   ;;  %742 = vset.pattern.permute.xlu1 (!%p159_p3), %v806_v2  ;;  %741 = vset.pattern.permute.xlu0 (!%p159_p3), %v806_v2  ;;  %v240_v6 = vld [vmem:[%s948_s2 + $0x18] sm:$0xff] (!%p159_p3)  ;;  %v243_v19 = vld [vmem:[%s948_s2 + $0x30] sm:$0xff] (!%p159_p3) }
   0x8   : > { %674 = vmatprep.mubr.msk.bf16.mxu0 (!%p159_p3), %vm411_vm0, %v772_v0  ;;  %676 = vmatprep.mubr.msk.bf16.mxu1 (!%p159_p3), %vm411_vm0, %v775_v1  ;;  %v237_v4 = vld [vmem:[%s948_s2] sm:$0xff] (!%p159_p3)  ;;  %v238_v9 = vld [vmem:[%s948_s2 + $0x8] sm:$0xff] (!%p159_p3)  ;;  %v244_v18 = vld [vmem:[%s948_s2 + $0x38] sm:$0xff] (!%p159_p3) }
   0x9   : > { %257 = vperm.xlu1 (!%p159_p3), %742, %v239_v3   ;;  %247 = vperm.xlu0 (!%p159_p3), %741, %v237_v4   ;;  %v242_v12 = vld [vmem:[%s948_s2 + $0x28] sm:$0xff] (!%p159_p3)  ;;  %v241_v17 = vld [vmem:[%s948_s2 + $0x20] sm:$0xff] (!%p159_p3)  ;;  %v776_v31 = vld [vmem:[%s947_s1 + $0x14] ss:$8 sps:$4 sm:$0xff] (!%p159_p3)  }
   0xa   : > { %v770_v29 = vld [vmem:[%s947_s1] ss:$8 sps:$4 sm:$0xff] (!%p159_p3)   ;;  %v778_v32 = vld [vmem:[%s947_s1 + $0x34] ss:$8 sps:$4 sm:$0xff] (!%p159_p3)   ;;  %v780_v33 = vld [vmem:[%s947_s1 + $0x10] ss:$8 sps:$4 sm:$0xff] (!%p159_p3)  }
   0xb   : > { %v773_v30 = vld [vmem:[%s947_s1 + $0x20] ss:$8 sps:$4 sm:$0xff] (!%p159_p3)   ;;  %v781_v34 = vld [vmem:[%s947_s1 + $0x30] ss:$8 sps:$4 sm:$0xff] (!%p159_p3)  }
   0xd   : > { %262 = vperm.xlu1 (!%p159_p3), %742, %v240_v6   ;;  %252 = vperm.xlu0 (!%p159_p3), %741, %v238_v9  }
   0xe   : > { %s955_s12 = smov (!%p191_p4, %s796_s12), 1 }
   0xf   : > { %s715_s20 = smul.u32 144, %s955_s12  ;;  %s688_s29 = sshll.u32 %s955_s12, 6 }
  0x10   : > { %s927_s5 = scalar_lea.vmem %s949_s3, %s688_s29 }
  0x11   : > { %s865_s27 = scalar_lea.vmem %s946_s0, %s715_s20  ;;  %272 = vperm.xlu1 %742, %v242_v12   ;;  %267 = vperm.xlu0 %741, %v241_v17  }
  0x12   : > { %v743_v5 = vld [vmem:[%s865_s27 + $0x4] ss:$8 sps:$4 sm:$0xff]   ;;  %v745_v7 = vld [vmem:[%s865_s27] ss:$8 sps:$4 sm:$0xff]   ;;  %v746_v8 = vld [vmem:[%s865_s27 + $0x14] ss:$8 sps:$4 sm:$0xff]  }
  0x13   : > { %424 = vmatprep.subr.bf16.mxu0 %v743_v5  ;;  %697 = vmatprep.subr.bf16.mxu1 %v743_v5  ;;  %v748_v10 = vld [vmem:[%s865_s27 + $0x10] ss:$8 sps:$4 sm:$0xff]   ;;  %v749_v11 = vld [vmem:[%s865_s27 + $0x24] ss:$8 sps:$4 sm:$0xff]   ;;  %v751_v13 = vld [vmem:[%s865_s27 + $0x20] ss:$8 sps:$4 sm:$0xff]  }
  0x14   : > { %425 = vmatpush1.bf16.msra.mxu0 %v745_v7  ;;  %706 = vmatpush1.bf16.msra.mxu1 %v745_v7  ;;  %v752_v14 = vld [vmem:[%s865_s27 + $0x34] ss:$8 sps:$4 sm:$0xff]   ;;  %v754_v15 = vld [vmem:[%s865_s27 + $0x30] ss:$8 sps:$4 sm:$0xff]   ;;  %v755_v16 = vld [vmem:[%s865_s27 + $0x44] ss:$8 sps:$4 sm:$0xff]  }
  0x15   : > { %426 = vmatprep.subr.bf16.mxu0 %v746_v8  ;;  %698 = vmatprep.subr.bf16.mxu1 %v746_v8  ;;  %v757_v20 = vld [vmem:[%s865_s27 + $0x40] ss:$8 sps:$4 sm:$0xff]   ;;  %v758_v21 = vld [vmem:[%s865_s27 + $0x54] ss:$8 sps:$4 sm:$0xff]   ;;  %v760_v22 = vld [vmem:[%s865_s27 + $0x50] ss:$8 sps:$4 sm:$0xff]  }
  0x16   : > { %282 = vperm.xlu1 %742, %v244_v18   ;;  %277 = vperm.xlu0 %741, %v243_v19   ;;  %v761_v23 = vld [vmem:[%s865_s27 + $0x64] ss:$8 sps:$4 sm:$0xff]   ;;  %v763_v24 = vld [vmem:[%s865_s27 + $0x60] ss:$8 sps:$4 sm:$0xff]   ;;  %v764_v25 = vld [vmem:[%s865_s27 + $0x74] ss:$8 sps:$4 sm:$0xff]  }
  0x17   : > { %v766_v26 = vld [vmem:[%s865_s27 + $0x70] ss:$8 sps:$4 sm:$0xff]   ;;  %v767_v27 = vld [vmem:[%s865_s27 + $0x84] ss:$8 sps:$4 sm:$0xff]   ;;  %v769_v28 = vld [vmem:[%s865_s27 + $0x80] ss:$8 sps:$4 sm:$0xff]  }
  0x18   : > { %427 = vmatpush1.bf16.msra.mxu0 %v748_v10  ;;  %707 = vmatpush1.bf16.msra.mxu1 %v748_v10 }
  0x19   : > { %428 = vmatprep.subr.bf16.mxu0 %v749_v11  ;;  %699 = vmatprep.subr.bf16.mxu1 %v749_v11 }
  0x1c   : > { %429 = vmatpush1.bf16.msra.mxu0 %v751_v13  ;;  %708 = vmatpush1.bf16.msra.mxu1 %v751_v13 }
  0x1d   : > { %430 = vmatprep.subr.bf16.mxu0 %v752_v14  ;;  %700 = vmatprep.subr.bf16.mxu1 %v752_v14 }
  0x20   : > { %431 = vmatpush1.bf16.msra.mxu0 %v754_v15  ;;  %709 = vmatpush1.bf16.msra.mxu1 %v754_v15 }
  0x21   : > { %432 = vmatprep.subr.bf16.mxu0 %v755_v16  ;;  %701 = vmatprep.subr.bf16.mxu1 %v755_v16 }
  0x24   : > { %433 = vmatpush1.bf16.msra.mxu0 %v757_v20  ;;  %710 = vmatpush1.bf16.msra.mxu1 %v757_v20 }
  0x25   : > { %434 = vmatprep.subr.bf16.mxu0 %v758_v21  ;;  %702 = vmatprep.subr.bf16.mxu1 %v758_v21 }
  0x28   : > { %435 = vmatpush1.bf16.msra.mxu0 %v760_v22  ;;  %711 = vmatpush1.bf16.msra.mxu1 %v760_v22 }
  0x29   : > { %436 = vmatprep.subr.bf16.mxu0 %v761_v23  ;;  %703 = vmatprep.subr.bf16.mxu1 %v761_v23 }
  0x2c   : > { %437 = vmatpush1.bf16.msra.mxu0 %v763_v24  ;;  %712 = vmatpush1.bf16.msra.mxu1 %v763_v24 }
  0x2d   : > { %438 = vmatprep.subr.bf16.mxu0 %v764_v25  ;;  %704 = vmatprep.subr.bf16.mxu1 %v764_v25 }
  0x30   : > { %439 = vmatpush1.bf16.msra.mxu0 %v766_v26  ;;  %713 = vmatpush1.bf16.msra.mxu1 %v766_v26 }
  0x31   : > { %440 = vmatprep.subr.bf16.mxu0 %v767_v27  ;;  %705 = vmatprep.subr.bf16.mxu1 %v767_v27 }
  0x34   : > { %441 = vmatpush1.bf16.msra.mxu0 %v769_v28  ;;  %714 = vmatpush1.bf16.msra.mxu1 %v769_v28 }
  0x37   : > { %457 = vmatmul.mubr.bf16.vlgmr.msra.gmra.mrb[0].mxu0 %v770_v29  ;;  %477 = vmatmul.mubr.bf16.vlgmr.msra.gmra.mrb[0].mxu1 %v773_v30 }
  0x38   : > { %675 = vmatprep.mubr.msk.bf16.mxu0 %vm411_vm0, %v776_v31  ;;  %677 = vmatprep.mubr.msk.bf16.mxu1 %vm411_vm0, %v778_v32 }
  0x3f   : > { %467 = vmatmul.mubr.bf16.gmra.mrb[4].mxu0 %v780_v33  ;;  %487 = vmatmul.mubr.bf16.gmra.mrb[4].mxu1 %v781_v34 }
  0x88   : > { %v258_v35 = vpop.permute.xlu1 %257  ;;  %v248_v36 = vpop.permute.xlu0 %247 }
  0x8c   : > { %v263_v37 = vpop.permute.xlu1 %262  ;;  %v253_v38 = vpop.permute.xlu0 %252 }
  0x90   : > { %v273_v39 = vpop.permute.xlu1 %272  ;;  %v268_v40 = vpop.permute.xlu0 %267 }
  0x95   : > { %v283_v61 = vpop.permute.xlu1 %282  ;;  %v278_v62 = vpop.permute.xlu0 %277 }
 0x10a   : > { %v458_v41 = vpop.f32.mrb[0].mxu0  ;;  %v478_v42 = vpop.f32.mrb[0].mxu1 }
 0x10b   : > { %v459_v43 = vadd.f32 %v458_v41, %v248_v36  ;;  %v479_v44 = vadd.f32 %v478_v42, %v268_v40  ;;  %v460_v45 = vpop.f32.mrb[1].mxu0  ;;  %v480_v46 = vpop.f32.mrb[1].mxu1 }
 0x10c   : > { %v461_v47 = vadd.f32 %v460_v45, %v248_v36  ;;  %v481_v48 = vadd.f32 %v480_v46, %v268_v40  ;;  %v462_v49 = vpop.f32.mrb[2].mxu0  ;;  %v482_v50 = vpop.f32.mrb[2].mxu1 }
 0x10d   : > { %v463_v51 = vadd.f32 %v462_v49, %v253_v38  ;;  %v483_v52 = vadd.f32 %v482_v50, %v273_v39  ;;  %v464_v53 = vpop.f32.mrb[3].mxu0  ;;  %v484_v54 = vpop.f32.mrb[3].mxu1 }
 0x10e   : > { %v689_v55 = vpack.c.bf16 %v461_v47, %v459_v43  ;;  %v693_v56 = vpack.c.bf16 %v481_v48, %v479_v44  ;;  %v465_v57 = vadd.f32 %v464_v53, %v253_v38  ;;  %v485_v58 = vadd.f32 %v484_v54, %v273_v39 }
 0x110   : > { %545 = vst [vmem:[%s927_s5] sm:$0xff] %v689_v55  ;;  %549 = vst [vmem:[%s927_s5 + $0x20] sm:$0xff] %v693_v56  ;;  %v690_v59 = vpack.c.bf16 %v465_v57, %v463_v51  ;;  %v694_v60 = vpack.c.bf16 %v485_v58, %v483_v52 }
 0x112   : > { %546 = vst [vmem:[%s927_s5 + $0x8] sm:$0xff] %v690_v59  ;;  %550 = vst [vmem:[%s927_s5 + $0x28] sm:$0xff] %v694_v60  ;;  %v468_v63 = vpop.f32.mrb[4].mxu0  ;;  %v488_v0 = vpop.f32.mrb[4].mxu1 }
 0x113   : > { %v469_v1 = vadd.f32 %v468_v63, %v258_v35  ;;  %v489_v2 = vadd.f32 %v488_v0, %v278_v62  ;;  %v470_v3 = vpop.f32.mrb[5].mxu0  ;;  %v490_v4 = vpop.f32.mrb[5].mxu1 }
 0x114   : > { %v471_v5 = vadd.f32 %v470_v3, %v258_v35  ;;  %v491_v6 = vadd.f32 %v490_v4, %v278_v62  ;;  %v472_v7 = vpop.f32.mrb[6].mxu0  ;;  %v492_v8 = vpop.f32.mrb[6].mxu1 }
 0x115   : > { %v473_v9 = vadd.f32 %v472_v7, %v263_v37  ;;  %v493_v10 = vadd.f32 %v492_v8, %v283_v61  ;;  %v474_v11 = vpop.f32.mrb[7].mxu0  ;;  %v494_v12 = vpop.f32.mrb[7].mxu1 }
 0x116   : > { %v691_v13 = vpack.c.bf16 %v471_v5, %v469_v1  ;;  %v695_v14 = vpack.c.bf16 %v491_v6, %v489_v2  ;;  %v475_v15 = vadd.f32 %v474_v11, %v263_v37  ;;  %v495_v16 = vadd.f32 %v494_v12, %v283_v61 }
 0x118   : > { %547 = vst [vmem:[%s927_s5 + $0x10] sm:$0xff] %v691_v13  ;;  %551 = vst [vmem:[%s927_s5 + $0x30] sm:$0xff] %v695_v14  ;;  %v692_v17 = vpack.c.bf16 %v475_v15, %v473_v9  ;;  %v696_v18 = vpack.c.bf16 %v495_v16, %v493_v10 }
 0x11a   : > { %548 = vst [vmem:[%s927_s5 + $0x18] sm:$0xff] %v692_v17  ;;  %552 = vst [vmem:[%s927_s5 + $0x38] sm:$0xff] %v696_v18 }
 0x11b PF: > { %s13_s14 = sadd.s32 1, %s804_s14   ;;  %s950_s12 = smov %s800_s13 }
 0x11c   : > { %p10_p5 = scmp.ge.s32.totalorder %s13_s14, 4   ;;  %s951_s13 = smov %s953_s15 }
 0x11e   :  { %12 = sbr.rel (!%p10_p5) target bundleno = 2 (0x2), region = 62 }

// kernel: model_forward.35
= control target key start
LH: loop header
LB: loop body
LE: loop exit
PB: predicated region body
PF: predicated region fallthrough
CT: control target
= control target key end

     0   :  { %s1154_s12 = smov 0   ;;  %s1156_s13 = smov 0   ;;  %s1328_s0 = inlined_call_operand.vmem [shape: bf16[2,144,1024], index: 0, kind: input, shape index: {}]   ;;  %s1329_s1 = inlined_call_operand.vmem [shape: bf16[3,144], index: 1, kind: input, shape index: {}]   ;;  %s1330_s2 = inlined_call_operand.vmem [shape: f32[3,1], index: 2, kind: input, shape index: {}]   ;;  %s1331_s3 = inlined_call_operand.vmem [shape: bf16[2,3,1024], index: 3, kind: output, shape index: {}]  }
   0x1   :  { %s1158_s14 = smov 0  }
   0x2 LB: > { %s25_s15 = sadd.s32 1, %s1126_s13  ;;  %p992_p0 = scmp.ge.s32.totalorder %s1130_s14, 1  ;;  %s1130_s14 = sphi %s1158_s14, %s13_s14   ;;  %s1126_s13 = sphi %s1156_s13, %s1341_s13   ;;  %s1122_s12 = sphi %s1154_s12, %s1340_s12  }
   0x3   : > { %p27_p1 = scmp.ge.s32.totalorder %s25_s15, 2  ;;  %p158_p2 = scmp.lt.s32.totalorder %s1130_s14, 3 }
   0x5   : > { %s1343_s15 = smov (%p27_p1, %s25_s15), 0  ;;  %p159_p3 = pnand %p992_p0, %p158_p2 }
   0x6   : > { %p191_p4 = scmp.lt.s32.totalorder (!%p159_p3), %s1122_s12, 1  ;;  %v1175_v0 = vld.sshfl [vmem:[%s1329_s1] sm:$0x33 pattern:$0x76325410] (!%p159_p3)  ;;  %vm660_vm0 = vcmask (!%p159_p3), 130048  }
   0x7   : > { %162 = sbr.rel (%p159_p3) target bundleno = 317 (0x13d), region = 32  ;;  %v1179_v1 = vcombine.high (!%p159_p3), %v1175_v0, %v1175_v0  ;;  %v284_v2 = vld [vmem:[%s1330_s2] sm:$0x7] (!%p159_p3)  ;;  %v1132_v3 = vmov (!%p159_p3), 0   ;;  %vm880_vm1 = vcmask (!%p159_p3), 1041408   ;;  %vm883_vm3 = vcmask (!%p159_p3), 1043458  }
   0x8   : > { %1107 = vset.pattern.permute.xlu0 (!%p159_p3), %v1132_v3  ;;  %vm881_vm2 = vsmask.f32 (!%p159_p3), 1280  ;;  %vm884_vm4 = vsmask.f32 (!%p159_p3), 3328  ;;  %vm887_vm7 = vcmask (!%p159_p3), 1045508   ;;  %vm891_vm11 = vcmask (!%p159_p3), 1047558  }
   0x9   : > { %1069 = vmatprep.mubr.msk.bf16.mxu0 (!%p159_p3), %vm660_vm0, %v1179_v1  ;;  %1070 = vmatprep.mubr.msk.bf16.mxu1 (!%p159_p3), %vm660_vm0, %v1179_v1  ;;  %vm1276_vm5 = vmand (!%p159_p3), %vm880_vm1, %vm881_vm2  ;;  %vm888_vm8 = vsmask.f32 (!%p159_p3), 5376  ;;  %vm892_vm12 = vsmask.f32 (!%p159_p3), 7424 }
   0xa   : > { %287 = vperm.xlu0 (!%p159_p3), %1107, %v284_v2   ;;  %vm1280_vm6 = vmand (!%p159_p3), %vm883_vm3, %vm884_vm4 }
   0xb   : > { %vm886_vm9 = vmor (!%p159_p3), %vm1280_vm6, %vm1276_vm5 }
   0xc   : > { %vm889_vm10 = vmand (!%p159_p3), %vm887_vm7, %vm888_vm8 }
   0xd   : > { %vm1294_vm13 = vmor (!%p159_p3), %vm889_vm10, %vm886_vm9 }
   0xe   : > { %s1345_s12 = smov (!%p191_p4, %s1122_s12), 1  ;;  %vm1301_vm14 = vmand %vm891_vm11, %vm892_vm12 }
   0xf   : > { %s1080_s20 = smul.u32 576, %s1345_s12  ;;  %s1079_s24 = sshll.u32 %s1345_s12, 4  ;;  %vm894_vm15 = vmor %vm1301_vm14, %vm1294_vm13 }
  0x10   : > { %s208_s27 = scalar_lea.vmem %s1331_s3, %s1079_s24 }
  0x11   : > { %s1194_s23 = scalar_lea.vmem %s1328_s0, %s1080_s20 }
  0x12   : > { %v212_v4 = vld [vmem:[%s1194_s23] sm:$0xff]  ;;  %v213_v6 = vld [vmem:[%s1194_s23 + $0x8] sm:$0xff] }
  0x13   : > { %v216_v5 = vld [vmem:[%s1194_s23 + $0x20] sm:$0xff]  ;;  %v217_v8 = vld [vmem:[%s1194_s23 + $0x28] sm:$0xff] }
  0x14   : > { %v998_v7 = vcombine.high %v212_v4, %v216_v5  ;;  %v997_v9 = vcombine.low %v212_v4, %v216_v5  ;;  %v220_v10 = vld [vmem:[%s1194_s23 + $0x40] sm:$0xff]  ;;  %v1000_v12 = vcombine.high %v213_v6, %v217_v8  ;;  %v999_v13 = vcombine.low %v213_v6, %v217_v8  ;;  %v221_v15 = vld [vmem:[%s1194_s23 + $0x48] sm:$0xff] }
  0x15   : > { %v224_v11 = vld [vmem:[%s1194_s23 + $0x60] sm:$0xff]  ;;  %v225_v16 = vld [vmem:[%s1194_s23 + $0x68] sm:$0xff] }
  0x16   : > { %v1006_v14 = vcombine.high %v220_v10, %v224_v11  ;;  %v228_v17 = vld [vmem:[%s1194_s23 + $0x80] sm:$0xff]  ;;  %664 = vmatprep.subr.bf16.mxu0 %v998_v7  ;;  %v1008_v18 = vcombine.high %v221_v15, %v225_v16  ;;  %v229_v20 = vld [vmem:[%s1194_s23 + $0x88] sm:$0xff]  ;;  %705 = vmatprep.subr.bf16.mxu1 %v1000_v12  ;;  %v1005_v22 = vcombine.low %v220_v10, %v224_v11  ;;  %v214_v12 = vld [vmem:[%s1194_s23 + $0x10] sm:$0xff] }
  0x17   : > { %v232_v19 = vld [vmem:[%s1194_s23 + $0xa0] sm:$0xff]  ;;  %v233_v21 = vld [vmem:[%s1194_s23 + $0xa8] sm:$0xff]  ;;  %665 = vmatpush1.bf16.msra.mxu0 %v997_v9  ;;  %706 = vmatpush1.bf16.msra.mxu1 %v999_v13  ;;  %v1007_v23 = vcombine.low %v221_v15, %v225_v16  ;;  %v218_v13 = vld [vmem:[%s1194_s23 + $0x30] sm:$0xff] }
  0x18   : > { %666 = vmatprep.subr.bf16.mxu0 %v1006_v14  ;;  %v1014_v24 = vcombine.high %v228_v17, %v232_v19  ;;  %707 = vmatprep.subr.bf16.mxu1 %v1008_v18  ;;  %v1016_v25 = vcombine.high %v229_v20, %v233_v21  ;;  %v236_v26 = vld [vmem:[%s1194_s23 + $0xc0] sm:$0xff]  ;;  %v237_v28 = vld [vmem:[%s1194_s23 + $0xc8] sm:$0xff]  ;;  %v1013_v30 = vcombine.low %v228_v17, %v232_v19  ;;  %v215_v14 = vld [vmem:[%s1194_s23 + $0x18] sm:$0xff] }
  0x19   : > { %v240_v27 = vld [vmem:[%s1194_s23 + $0xe0] sm:$0xff]  ;;  %v241_v29 = vld [vmem:[%s1194_s23 + $0xe8] sm:$0xff]  ;;  %v1015_v31 = vcombine.low %v229_v20, %v233_v21  ;;  %v219_v15 = vld [vmem:[%s1194_s23 + $0x38] sm:$0xff]  ;;  %v1002_v18 = vcombine.high %v214_v12, %v218_v13 }
  0x1a   : > { %v1022_v32 = vcombine.high %v236_v26, %v240_v27  ;;  %v1024_v33 = vcombine.high %v237_v28, %v241_v29  ;;  %v244_v34 = vld [vmem:[%s1194_s23 + $0x100] sm:$0xff]  ;;  %v245_v36 = vld [vmem:[%s1194_s23 + $0x108] sm:$0xff]  ;;  %v1021_v38 = vcombine.low %v236_v26, %v240_v27  ;;  %v1023_v39 = vcombine.low %v237_v28, %v241_v29  ;;  %v222_v20 = vld [vmem:[%s1194_s23 + $0x50] sm:$0xff] }
  0x1b   : > { %667 = vmatpush1.bf16.msra.mxu0 %v1005_v22  ;;  %708 = vmatpush1.bf16.msra.mxu1 %v1007_v23  ;;  %v248_v35 = vld [vmem:[%s1194_s23 + $0x120] sm:$0xff]  ;;  %v249_v37 = vld [vmem:[%s1194_s23 + $0x128] sm:$0xff]  ;;  %v1004_v19 = vcombine.high %v215_v14, %v219_v15  ;;  %v226_v21 = vld [vmem:[%s1194_s23 + $0x70] sm:$0xff] }
  0x1c   : > { %668 = vmatprep.subr.bf16.mxu0 %v1014_v24  ;;  %709 = vmatprep.subr.bf16.mxu1 %v1016_v25  ;;  %v1030_v40 = vcombine.high %v244_v34, %v248_v35  ;;  %v1032_v41 = vcombine.high %v245_v36, %v249_v37  ;;  %v252_v42 = vld [vmem:[%s1194_s23 + $0x140] sm:$0xff]  ;;  %v253_v44 = vld [vmem:[%s1194_s23 + $0x148] sm:$0xff]  ;;  %v1029_v46 = vcombine.low %v244_v34, %v248_v35  ;;  %v223_v22 = vld [vmem:[%s1194_s23 + $0x58] sm:$0xff] }
  0x1d   : > { %v256_v43 = vld [vmem:[%s1194_s23 + $0x160] sm:$0xff]  ;;  %v257_v45 = vld [vmem:[%s1194_s23 + $0x168] sm:$0xff]  ;;  %v1031_v47 = vcombine.low %v245_v36, %v249_v37  ;;  %v227_v23 = vld [vmem:[%s1194_s23 + $0x78] sm:$0xff]  ;;  %v1001_v24 = vcombine.low %v214_v12, %v218_v13  ;;  %v1003_v25 = vcombine.low %v215_v14, %v219_v15  ;;  %v1010_v26 = vcombine.high %v222_v20, %v226_v21 }
  0x1e   : > { %v1038_v48 = vcombine.high %v252_v42, %v256_v43  ;;  %v1040_v49 = vcombine.high %v253_v44, %v257_v45  ;;  %v260_v50 = vld [vmem:[%s1194_s23 + $0x180] sm:$0xff]  ;;  %v261_v52 = vld [vmem:[%s1194_s23 + $0x188] sm:$0xff]  ;;  %v1037_v54 = vcombine.low %v252_v42, %v256_v43  ;;  %v1039_v55 = vcombine.low %v253_v44, %v257_v45  ;;  %v230_v28 = vld [vmem:[%s1194_s23 + $0x90] sm:$0xff] }
  0x1f   : > { %669 = vmatpush1.bf16.msra.mxu0 %v1013_v30  ;;  %710 = vmatpush1.bf16.msra.mxu1 %v1015_v31  ;;  %v264_v51 = vld [vmem:[%s1194_s23 + $0x1a0] sm:$0xff]  ;;  %v265_v53 = vld [vmem:[%s1194_s23 + $0x1a8] sm:$0xff]  ;;  %v1012_v27 = vcombine.high %v223_v22, %v227_v23  ;;  %v234_v29 = vld [vmem:[%s1194_s23 + $0xb0] sm:$0xff] }
  0x20   : > { %670 = vmatprep.subr.bf16.mxu0 %v1022_v32  ;;  %711 = vmatprep.subr.bf16.mxu1 %v1024_v33  ;;  %v1046_v56 = vcombine.high %v260_v50, %v264_v51  ;;  %v1048_v57 = vcombine.high %v261_v52, %v265_v53  ;;  %v268_v58 = vld [vmem:[%s1194_s23 + $0x1c0] sm:$0xff]  ;;  %v269_v60 = vld [vmem:[%s1194_s23 + $0x1c8] sm:$0xff]  ;;  %v1045_v62 = vcombine.low %v260_v50, %v264_v51  ;;  %v231_v30 = vld [vmem:[%s1194_s23 + $0x98] sm:$0xff] }
  0x21   : > { %v272_v59 = vld [vmem:[%s1194_s23 + $0x1e0] sm:$0xff]  ;;  %v273_v61 = vld [vmem:[%s1194_s23 + $0x1e8] sm:$0xff]  ;;  %v1047_v63 = vcombine.low %v261_v52, %v265_v53  ;;  %v235_v31 = vld [vmem:[%s1194_s23 + $0xb8] sm:$0xff]  ;;  %v1009_v32 = vcombine.low %v222_v20, %v226_v21  ;;  %v1011_v33 = vcombine.low %v223_v22, %v227_v23  ;;  %v1018_v34 = vcombine.high %v230_v28, %v234_v29 }
  0x22   : > { %v1054_v2 = vcombine.high %v268_v58, %v272_v59  ;;  %v1056_v3 = vcombine.high %v269_v60, %v273_v61  ;;  %v276_v4 = vld [vmem:[%s1194_s23 + $0x200] sm:$0xff]  ;;  %v277_v6 = vld [vmem:[%s1194_s23 + $0x208] sm:$0xff]  ;;  %v1053_v8 = vcombine.low %v268_v58, %v272_v59  ;;  %v1055_v9 = vcombine.low %v269_v60, %v273_v61  ;;  %v238_v36 = vld [vmem:[%s1194_s23 + $0xd0] sm:$0xff] }
  0x23   : > { %671 = vmatpush1.bf16.msra.mxu0 %v1021_v38  ;;  %712 = vmatpush1.bf16.msra.mxu1 %v1023_v39  ;;  %v280_v5 = vld [vmem:[%s1194_s23 + $0x220] sm:$0xff]  ;;  %v281_v7 = vld [vmem:[%s1194_s23 + $0x228] sm:$0xff]  ;;  %v1020_v35 = vcombine.high %v231_v30, %v235_v31  ;;  %v242_v37 = vld [vmem:[%s1194_s23 + $0xf0] sm:$0xff]  ;;  %v1133_v23 = vmov 1983009808  }
  0x24   : > { %672 = vmatprep.subr.bf16.mxu0 %v1030_v40  ;;  %713 = vmatprep.subr.bf16.mxu1 %v1032_v41  ;;  %v1062_v10 = vcombine.high %v276_v4, %v280_v5  ;;  %v1064_v11 = vcombine.high %v277_v6, %v281_v7  ;;  %v1061_v16 = vcombine.low %v276_v4, %v280_v5  ;;  %v239_v38 = vld [vmem:[%s1194_s23 + $0xd8] sm:$0xff]  ;;  %v246_v44 = vld [vmem:[%s1194_s23 + $0x110] sm:$0xff] }
  0x25   : > { %v1063_v17 = vcombine.low %v277_v6, %v281_v7  ;;  %v243_v39 = vld [vmem:[%s1194_s23 + $0xf8] sm:$0xff]  ;;  %v1017_v40 = vcombine.low %v230_v28, %v234_v29  ;;  %v1019_v41 = vcombine.low %v231_v30, %v235_v31  ;;  %v1026_v42 = vcombine.high %v238_v36, %v242_v37  ;;  %v250_v45 = vld [vmem:[%s1194_s23 + $0x130] sm:$0xff] }
  0x26   : > { %v1028_v43 = vcombine.high %v239_v38, %v243_v39  ;;  %v254_v51 = vld [vmem:[%s1194_s23 + $0x150] sm:$0xff]  ;;  %v255_v53 = vld [vmem:[%s1194_s23 + $0x158] sm:$0xff] }
  0x27   : > { %673 = vmatpush1.bf16.msra.mxu0 %v1029_v46  ;;  %714 = vmatpush1.bf16.msra.mxu1 %v1031_v47  ;;  %v247_v46 = vld [vmem:[%s1194_s23 + $0x118] sm:$0xff]  ;;  %v258_v52 = vld [vmem:[%s1194_s23 + $0x170] sm:$0xff] }
  0x28   : > { %674 = vmatprep.subr.bf16.mxu0 %v1038_v48  ;;  %715 = vmatprep.subr.bf16.mxu1 %v1040_v49  ;;  %v251_v47 = vld [vmem:[%s1194_s23 + $0x138] sm:$0xff]  ;;  %v1025_v48 = vcombine.low %v238_v36, %v242_v37  ;;  %v1034_v49 = vcombine.high %v246_v44, %v250_v45  ;;  %v262_v59 = vld [vmem:[%s1194_s23 + $0x190] sm:$0xff] }
  0x29   : > { %v1036_v50 = vcombine.high %v247_v46, %v251_v47  ;;  %v266_v60 = vld [vmem:[%s1194_s23 + $0x1b0] sm:$0xff]  ;;  %v263_v61 = vld [vmem:[%s1194_s23 + $0x198] sm:$0xff] }
  0x2a   : > { %v270_v5 = vld [vmem:[%s1194_s23 + $0x1d0] sm:$0xff]  ;;  %v271_v7 = vld [vmem:[%s1194_s23 + $0x1d8] sm:$0xff] }
  0x2b   : > { %675 = vmatpush1.bf16.msra.mxu0 %v1037_v54  ;;  %716 = vmatpush1.bf16.msra.mxu1 %v1039_v55  ;;  %v259_v54 = vld [vmem:[%s1194_s23 + $0x178] sm:$0xff]  ;;  %v1033_v55 = vcombine.low %v246_v44, %v250_v45  ;;  %v274_v6 = vld [vmem:[%s1194_s23 + $0x1f0] sm:$0xff] }
  0x2c   : > { %676 = vmatprep.subr.bf16.mxu0 %v1046_v56  ;;  %717 = vmatprep.subr.bf16.mxu1 %v1048_v57  ;;  %v1035_v56 = vcombine.low %v247_v46, %v251_v47  ;;  %v1042_v57 = vcombine.high %v254_v51, %v258_v52  ;;  %v1044_v58 = vcombine.high %v255_v53, %v259_v54  ;;  %v278_v13 = vld [vmem:[%s1194_s23 + $0x210] sm:$0xff]  ;;  %v279_v15 = vld [vmem:[%s1194_s23 + $0x218] sm:$0xff] }
  0x2d   : > { %v282_v14 = vld [vmem:[%s1194_s23 + $0x230] sm:$0xff] }
  0x2e   : > { %v1065_v21 = vcombine.low %v278_v13, %v282_v14 }
  0x2f   : > { %677 = vmatpush1.bf16.msra.mxu0 %v1045_v62  ;;  %718 = vmatpush1.bf16.msra.mxu1 %v1047_v63  ;;  %v267_v62 = vld [vmem:[%s1194_s23 + $0x1b8] sm:$0xff]  ;;  %v1041_v63 = vcombine.low %v254_v51, %v258_v52 }
  0x30   : > { %678 = vmatprep.subr.bf16.mxu0 %v1054_v2  ;;  %719 = vmatprep.subr.bf16.mxu1 %v1056_v3  ;;  %v1043_v2 = vcombine.low %v255_v53, %v259_v54  ;;  %v1050_v3 = vcombine.high %v262_v59, %v266_v60  ;;  %v1052_v4 = vcombine.high %v263_v61, %v267_v62 }
  0x33   : > { %679 = vmatpush1.bf16.msra.mxu0 %v1053_v8  ;;  %720 = vmatpush1.bf16.msra.mxu1 %v1055_v9  ;;  %v275_v8 = vld [vmem:[%s1194_s23 + $0x1f8] sm:$0xff]  ;;  %v1049_v9 = vcombine.low %v262_v59, %v266_v60 }
  0x34   : > { %680 = vmatprep.subr.bf16.mxu0 %v1062_v10  ;;  %721 = vmatprep.subr.bf16.mxu1 %v1064_v11  ;;  %v1051_v10 = vcombine.low %v263_v61, %v267_v62  ;;  %v1058_v11 = vcombine.high %v270_v5, %v274_v6  ;;  %v1060_v12 = vcombine.high %v271_v7, %v275_v8 }
  0x37   : > { %681 = vmatpush1.bf16.msra.mxu0 %v1061_v16  ;;  %722 = vmatpush1.bf16.msra.mxu1 %v1063_v17  ;;  %v283_v16 = vld [vmem:[%s1194_s23 + $0x238] sm:$0xff]  ;;  %v1057_v17 = vcombine.low %v270_v5, %v274_v6  ;;  %v898_v5 = vld [vmem:[%s208_s27 + $0x8] sm:$0xff] }
  0x38   : > { %746 = vmatprep.subr.bf16.mxu0 %v1002_v18  ;;  %787 = vmatprep.subr.bf16.mxu1 %v1004_v19  ;;  %v1059_v18 = vcombine.low %v271_v7, %v275_v8  ;;  %v1066_v19 = vcombine.high %v278_v13, %v282_v14  ;;  %v1068_v20 = vcombine.high %v279_v15, %v283_v16 }
  0x39   : > { %v1067_v22 = vcombine.low %v279_v15, %v283_v16 }
  0x3a   : > { %697 = vmatmul.mubr.bf16.vlgmr.msra.gmra.mrb[0].mxu0 %v1175_v0  ;;  %738 = vmatmul.mubr.bf16.vlgmr.msra.gmra.mrb[0].mxu1 %v1175_v0 }
  0x3b   : > { %747 = vmatpush1.bf16.msra.mxu0 %v1001_v24  ;;  %788 = vmatpush1.bf16.msra.mxu1 %v1003_v25  ;;  %v847_v24 = vunpack.c.l.s4 %v1133_v23  ;;  %v849_v25 = vlaneseq }
  0x3c   : > { %748 = vmatprep.subr.bf16.mxu0 %v1010_v26  ;;  %789 = vmatprep.subr.bf16.mxu1 %v1012_v27 }
  0x3d   : > { %1071 = vmatprep.mubr.msk.bf16.mxu0 %vm660_vm0, %v1179_v1  ;;  %1072 = vmatprep.mubr.msk.bf16.mxu1 %vm660_vm0, %v1179_v1  ;;  %v1027_v1 = vcombine.low %v239_v38, %v243_v39  ;;  %v848_v27 = vunpack.c.0.s8 %v847_v24  ;;  %v850_v28 = vshrl.u32 %v849_v25, 7 }
  0x3f   : > { %749 = vmatpush1.bf16.msra.mxu0 %v1009_v32  ;;  %790 = vmatpush1.bf16.msra.mxu1 %v1011_v33 }
  0x40   : > { %750 = vmatprep.subr.bf16.mxu0 %v1018_v34  ;;  %791 = vmatprep.subr.bf16.mxu1 %v1020_v35  ;;  %v851_v34 = vsub.s32 %v848_v27, %v850_v28 }
  0x43   : > { %751 = vmatpush1.bf16.msra.mxu0 %v1017_v40  ;;  %792 = vmatpush1.bf16.msra.mxu1 %v1019_v41 }
  0x44   : > { %752 = vmatprep.subr.bf16.mxu0 %v1026_v42  ;;  %793 = vmatprep.subr.bf16.mxu1 %v1028_v43 }
  0x47   : > { %753 = vmatpush1.bf16.msra.mxu0 %v1025_v48  ;;  %794 = vmatpush1.bf16.msra.mxu1 %v1027_v1  ;;  %v895_v1 = vld [vmem:[%s208_s27] sm:$0xff] }
  0x48   : > { %754 = vmatprep.subr.bf16.mxu0 %v1034_v49  ;;  %795 = vmatprep.subr.bf16.mxu1 %v1036_v50 }
  0x4b   : > { %755 = vmatpush1.bf16.msra.mxu0 %v1033_v55  ;;  %796 = vmatpush1.bf16.msra.mxu1 %v1035_v56 }
  0x4c   : > { %756 = vmatprep.subr.bf16.mxu0 %v1042_v57  ;;  %797 = vmatprep.subr.bf16.mxu1 %v1044_v58 }
  0x4f   : > { %757 = vmatpush1.bf16.msra.mxu0 %v1041_v63  ;;  %798 = vmatpush1.bf16.msra.mxu1 %v1043_v2 }
  0x50   : > { %758 = vmatprep.subr.bf16.mxu0 %v1050_v3  ;;  %799 = vmatprep.subr.bf16.mxu1 %v1052_v4 }
  0x53   : > { %759 = vmatpush1.bf16.msra.mxu0 %v1049_v9  ;;  %800 = vmatpush1.bf16.msra.mxu1 %v1051_v10 }
  0x54   : > { %760 = vmatprep.subr.bf16.mxu0 %v1058_v11  ;;  %801 = vmatprep.subr.bf16.mxu1 %v1060_v12 }
  0x57   : > { %761 = vmatpush1.bf16.msra.mxu0 %v1057_v17  ;;  %802 = vmatpush1.bf16.msra.mxu1 %v1059_v18 }
  0x58   : > { %762 = vmatprep.subr.bf16.mxu0 %v1066_v19  ;;  %803 = vmatprep.subr.bf16.mxu1 %v1068_v20 }
  0x5b   : > { %763 = vmatpush1.bf16.msra.mxu0 %v1065_v21  ;;  %804 = vmatpush1.bf16.msra.mxu1 %v1067_v22 }
  0x5e   : > { %779 = vmatmul.mubr.bf16.vlgmr.msra.gmra.mrb[4].mxu0 %v1175_v0  ;;  %820 = vmatmul.mubr.bf16.vlgmr.msra.gmra.mrb[4].mxu1 %v1175_v0 }
  0x89   : > { %v288_v30 = vpop.permute.xlu0 %287 }
 0x10d   : > { %v698_v0 = vpop.f32.mrb[0].mxu0  ;;  %v739_v31 = vpop.f32.mrb[0].mxu1 }
 0x10e   : > { %v699_v32 = vadd.f32 %v698_v0, %v288_v30  ;;  %v700_v33 = vpop.f32.mrb[1].mxu0  ;;  %v740_v36 = vadd.f32 %v739_v31, %v288_v30  ;;  %v741_v37 = vpop.f32.mrb[1].mxu1 }
 0x10f   : > { %v701_v35 = vadd.f32 %v700_v33, %v288_v30  ;;  %v702_v38 = vpop.f32.mrb[2].mxu0  ;;  %v742_v39 = vadd.f32 %v741_v37, %v288_v30  ;;  %v743_v40 = vpop.f32.mrb[2].mxu1 }
 0x110   : > { %v703_v41 = vpop.f32.mrb[3].mxu0  ;;  %v744_v44 = vpop.f32.mrb[3].mxu1 }
 0x111   : > { %v1073_v42 = vpack.c.bf16 %v701_v35, %v699_v32  ;;  %v1074_v45 = vpack.c.bf16 %v742_v39, %v740_v36 }
 0x113   : > { %v852_v47 = vrot.slane %v1073_v42, %v851_v34  ;;  %v859_v48 = vrot.slane %v1074_v45, %v851_v34 }
 0x115   : > { %v860_v49 = vcombine.low %v852_v47, %v859_v48 }
 0x117   : > { %v896_v50 = vsel %vm894_vm15, %v860_v49, %v895_v1 }
 0x118   : > { %897 = vst [vmem:[%s208_s27] sm:$0xff] %v896_v50 }
 0x131   : > { %v780_v51 = vpop.f32.mrb[4].mxu0  ;;  %v821_v53 = vpop.f32.mrb[4].mxu1 }
 0x132   : > { %v781_v52 = vadd.f32 %v780_v51, %v288_v30  ;;  %v782_v54 = vpop.f32.mrb[5].mxu0  ;;  %v822_v55 = vadd.f32 %v821_v53, %v288_v30  ;;  %v823_v57 = vpop.f32.mrb[5].mxu1 }
 0x133   : > { %v783_v56 = vadd.f32 %v782_v54, %v288_v30  ;;  %v784_v58 = vpop.f32.mrb[6].mxu0  ;;  %v824_v59 = vadd.f32 %v823_v57, %v288_v30  ;;  %v825_v60 = vpop.f32.mrb[6].mxu1 }
 0x134   : > { %v785_v61 = vpop.f32.mrb[7].mxu0  ;;  %v826_v63 = vpop.f32.mrb[7].mxu1 }
 0x135   : > { %v1075_v62 = vpack.c.bf16 %v783_v56, %v781_v52  ;;  %v1076_v2 = vpack.c.bf16 %v824_v59, %v822_v55 }
 0x137   : > { %v869_v3 = vrot.slane %v1075_v62, %v851_v34  ;;  %v876_v4 = vrot.slane %v1076_v2, %v851_v34 }
 0x139   : > { %v877_v6 = vcombine.low %v869_v3, %v876_v4 }
 0x13b   : > { %v899_v7 = vsel %vm894_vm15, %v877_v6, %v898_v5 }
 0x13c   : > { %900 = vst [vmem:[%s208_s27 + $0x8] sm:$0xff] %v899_v7 }
 0x13d PF: > { %s13_s14 = sadd.s32 1, %s1130_s14   ;;  %s1340_s12 = smov %s1126_s13 }
 0x13e   : > { %p10_p5 = scmp.ge.s32.totalorder %s13_s14, 4   ;;  %s1341_s13 = smov %s1343_s15 }
 0x140   :  { %12 = sbr.rel (!%p10_p5) target bundleno = 2 (0x2), region = 62 }

</bundles_post_ra>
